<compile_context>
chip_gen: v5e
topology: v5e:2x2
jax: 0.10.0
libtpu: 0.0.40
codegen_flags: <defaults>
</compile_context>

<pallas_src>
import functools
from typing import NamedTuple

import jax
import jax.numpy as jnp
from jax.experimental import pallas as pl
from jax.experimental.pallas import tpu as pltpu

_LANE = 128
_SUBLANE = 8


def _round_up(n, m):
    return ((n + m - 1) // m) * m


class ModelMeta(NamedTuple):
    """Static (hashable) layout metadata derived at init time."""
    layer_meta: tuple     # per layer: (slab_idx, lane_offset, out_width)
    bias_slices: tuple    # per layer: (lane_offset, out_width)
    n_slabs: int
    latent_dim: int


# -----------------------------------------------------------------------------
# Pallas kernel: 6 matmuls (BN pre-folded) + bias + ReLU, fully fused.
# bf16 MXU operands, f32 accumulation, f32 elementwise chain.
# -----------------------------------------------------------------------------
def _autoencoder_kernel(layer_meta, bias_slices, n_slabs, x_ref, *refs):
    slab_refs = refs[:n_slabs]
    bias_ref = refs[n_slabs]
    recon_ref = refs[n_slabs + 1]
    z_ref = refs[n_slabs + 2]

    def linear(h, layer):
        slab_idx, woff, n = layer_meta[layer]
        boff, bn_ = bias_slices[layer]
        w = slab_refs[slab_idx][:, woff:woff + n]          # bf16, static slice
        y = jnp.dot(h.astype(jnp.bfloat16), w,
                    preferred_element_type=jnp.float32)    # f32 accumulation
        return y + bias_ref[:, boff:boff + bn_]            # f32 bias add

    def linear_relu(h, layer):
        # ReLU; Dropout is the identity in eval mode.
        return jnp.maximum(linear(h, layer), 0.0)

    x = x_ref[...]

    # ---- encoder ----
    h = linear_relu(x, 0)
    h = linear_relu(h, 1)
    z = linear(h, 2)
    z_ref[...] = z

    # ---- decoder ----
    h = linear_relu(z, 3)
    h = linear_relu(h, 4)
    recon_ref[...] = linear(h, 5)


# -----------------------------------------------------------------------------
# Parameter construction (deterministic, synthetic), BN folding, packing.
# -----------------------------------------------------------------------------
def _make_linear(key, d_in, d_out):
    kw, kb = jax.random.split(key)
    bound = float(d_in) ** -0.5
    w = jax.random.uniform(kw, (d_in, d_out), jnp.float32, -bound, bound)
    b = jax.random.uniform(kb, (1, d_out), jnp.float32, -bound, bound)
    return w, b


def _make_bn(key, d, eps=1e-5):
    kg, kb, km, kv = jax.random.split(key, 4)
    gamma = 1.0 + 0.1 * jax.random.normal(kg, (1, d), jnp.float32)
    beta = 0.1 * jax.random.normal(kb, (1, d), jnp.float32)
    mean = 0.1 * jax.random.normal(km, (1, d), jnp.float32)
    var = 1.0 + 0.1 * jax.random.uniform(kv, (1, d), jnp.float32)
    return gamma, beta, mean, var, eps


def _fold_bn(w, b, bn):
    # (h @ w + b) * s + t  ==  h @ (w * s) + (b * s + t)  -- exact affine fold.
    gamma, beta, mean, var, eps = bn
    scale = gamma / jnp.sqrt(var + eps)
    shift = beta - mean * scale
    return w * scale, b * scale + shift


def _pack_biases(biases):
    """Concat all layer biases along lanes, each segment padded to 128 lanes."""
    segs, slices, off = [], [], 0
    for b in biases:
        d = int(b.shape[-1])
        pad = (-d) % _LANE
        segs.append(jnp.pad(b, ((0, 0), (0, pad))))
        slices.append((off, d))
        off += d + pad
    return jnp.concatenate(segs, axis=1), tuple(slices)


def _pack_weight_slabs(weights):
    """Group (already folded) weights by contraction dim K, concat along N.

    Returns (slabs_bf16: tuple of (K, totalN) arrays,
             layer_meta: per-layer (slab_idx, lane_offset, out_width)).
    """
    groups, order = {}, []
    for idx, w in enumerate(weights):
        k = int(w.shape[0])
        if k not in groups:
            groups[k] = []
            order.append(k)
        groups[k].append((idx, w))

    slabs = []
    layer_meta = [None] * len(weights)
    for slab_idx, k in enumerate(order):
        segs, off = [], 0
        for layer_idx, w in groups[k]:
            n = int(w.shape[1])
            pad = (-n) % _LANE
            segs.append(jnp.pad(w, ((0, 0), (0, pad))))
            layer_meta[layer_idx] = (slab_idx, off, n)
            off += n + pad
        slabs.append(jnp.concatenate(segs, axis=1).astype(jnp.bfloat16))
    return tuple(slabs), tuple(layer_meta)


def init_params(key, input_dim, latent_dim):
    keys = jax.random.split(key, 10)
    lin_dims = [(input_dim, 512), (512, 256), (256, latent_dim),
                (latent_dim, 256), (256, 512), (512, input_dim)]
    lins = [_make_linear(keys[i], din, dout)
            for i, (din, dout) in enumerate(lin_dims)]
    bns = [_make_bn(keys[6], 512), _make_bn(keys[7], 256),
           _make_bn(keys[8], 256), _make_bn(keys[9], 512)]

    # Fold eval-mode BN into the preceding Linear (layers 0, 1, 3, 4).
    folded, bn_idx = [], 0
    for layer in range(6):
        w, b = lins[layer]
        if layer in (0, 1, 3, 4):
            w, b = _fold_bn(w, b, bns[bn_idx])
            bn_idx += 1
        folded.append((w, b))

    slabs, layer_meta = _pack_weight_slabs([w for w, _ in folded])
    bias_packed, bias_slices = _pack_biases([b for _, b in folded])

    params = {"slabs": slabs, "bias": bias_packed}
    meta = ModelMeta(layer_meta=layer_meta, bias_slices=bias_slices,
                     n_slabs=len(slabs), latent_dim=latent_dim)
    raw = {"lin": lins, "bn": bns}        # kept only for reference checks
    return params, meta, raw


# -----------------------------------------------------------------------------
# Wrapper: batch grid (parallel), weights/bias pinned to block (0,0).
# -----------------------------------------------------------------------------
@functools.partial(jax.jit, static_argnames=("meta",))
def mutation_autoencoder_forward(x, params, meta):
    B, input_dim = x.shape
    latent_dim = meta.latent_dim

    # Batch tile: fill the 256-row MXU (v6e/v7x) at large B, shard the batch
    # axis across TensorCores; small batches run as a single grid step.
    if B >= 512:
        tb = 512
    elif B >= 256:
        tb = 256
    else:
        tb = _round_up(B, _SUBLANE)
    b_pad = _round_up(B, tb)
    if b_pad != B:
        x = jnp.pad(x, ((0, b_pad - B), (0, 0)))

    slabs = params["slabs"]
    bias = params["bias"]
    args = (x, *slabs, bias)

    in_specs = [pl.BlockSpec((tb, input_dim), lambda i: (i, 0))]
    for s in slabs:
        # Whole weight slab as one block, pinned to (0,0): fetched once, stays
        # VMEM-resident across all grid steps.
        in_specs.append(pl.BlockSpec(s.shape, lambda i: (0, 0)))
    in_specs.append(pl.BlockSpec(bias.shape, lambda i: (0, 0)))

    out_specs = (
        pl.BlockSpec((tb, input_dim), lambda i: (i, 0)),
        pl.BlockSpec((tb, latent_dim), lambda i: (i, 0)),
    )
    out_shape = (
        jax.ShapeDtypeStruct((b_pad, input_dim), jnp.float32),
        jax.ShapeDtypeStruct((b_pad, latent_dim), jnp.float32),
    )

    # VMEM budget: (weights + bias + io tiles) double-buffered + headroom.
    w_bytes = sum(int(s.size) * 2 for s in slabs)
    bias_bytes = int(bias.size) * 4
    tile_bytes = tb * (2 * input_dim + latent_dim) * 4
    vmem_limit = int(2 * (w_bytes + bias_bytes + tile_bytes) + (6 << 20))

    kernel = functools.partial(_autoencoder_kernel, meta.layer_meta,
                               meta.bias_slices, meta.n_slabs)

    recon, z = pl.pallas_call(
        kernel,
        grid=(b_pad // tb,),
        in_specs=in_specs,
        out_specs=out_specs,
        out_shape=out_shape,
        compiler_params=pltpu.CompilerParams(
            dimension_semantics=("parallel",),
            vmem_limit_bytes=vmem_limit,
        ),
    )(*args)

    # forward() for task='recon' returns (x_recon_logits, None, z)
    return recon[:B], None, z[:B]


# -----------------------------------------------------------------------------
# References.
# -----------------------------------------------------------------------------
def _reference_same_math(x, raw):
    """Pure-JAX replica of the kernel math (folded BN, bf16 dot operands)."""
    ws, bs, bn_idx = [], [], 0
    for layer in range(6):
        w, b = raw["lin"][layer]
        if layer in (0, 1, 3, 4):
            w, b = _fold_bn(w, b, raw["bn"][bn_idx])
            bn_idx += 1
        ws.append(w.astype(jnp.bfloat16))
        bs.append(b)

    def lin(h, i):
        return jnp.dot(h.astype(jnp.bfloat16), ws[i],
                       preferred_element_type=jnp.float32) + bs[i]

    h = jnp.maximum(lin(x, 0), 0.0)
    h = jnp.maximum(lin(h, 1), 0.0)
    z = lin(h, 2)
    h = jnp.maximum(lin(z, 3), 0.0)
    h = jnp.maximum(lin(h, 4), 0.0)
    return lin(h, 5), z


def _reference_f32(x, raw):
    """Full-precision f32 eval-mode forward of the original PyTorch module."""
    def bn(y, p):
        gamma, beta, mean, var, eps = p
        return (y - mean) / jnp.sqrt(var + eps) * gamma + beta

    def lin(h, i):
        w, b = raw["lin"][i]
        return h @ w + b

    h = jnp.maximum(bn(lin(x, 0), raw["bn"][0]), 0.0)
    h = jnp.maximum(bn(lin(h, 1), raw["bn"][1]), 0.0)
    z = lin(h, 2)
    h = jnp.maximum(bn(lin(z, 3), raw["bn"][2]), 0.0)
    h = jnp.maximum(bn(lin(h, 4), raw["bn"][3]), 0.0)
    return lin(h, 5), z


if __name__ == "__main__":
    B = 8             # batch
    INPUT_DIM = 256   # input_dim
    LATENT_DIM = 128  # latent_dim (module default)

    key = jax.random.PRNGKey(0)
    k_params, k_x = jax.random.split(key)
    params, meta, raw = init_params(k_params, INPUT_DIM, LATENT_DIM)
    x = jax.random.normal(k_x, (B, INPUT_DIM), jnp.float32)

    recon, cls_logits, z = mutation_autoencoder_forward(x, params, meta)
    recon = jax.block_until_ready(recon)
    z = jax.block_until_ready(z)

    assert cls_logits is None
    assert recon.shape == (B, INPUT_DIM) and z.shape == (B, LATENT_DIM)

    # (1) Same-math reference (folded BN, bf16 MXU operands) -- tight check.
    recon_sm, z_sm = _reference_same_math(x, raw)
    assert jnp.allclose(recon, recon_sm, atol=2e-3, rtol=2e-3), "recon vs same-math"
    assert jnp.allclose(z, z_sm, atol=2e-3, rtol=2e-3), "z vs same-math"

    # (2) Full f32 reference of the original module (eval mode) -- bounds the
    #     bf16 weight-quantization error through the whole 6-layer chain.
    recon_f32, z_f32 = _reference_f32(x, raw)
    assert jnp.allclose(recon, recon_f32, atol=5e-2, rtol=5e-2), "recon vs f32"
    assert jnp.allclose(z, z_f32, atol=5e-2, rtol=5e-2), "z vs f32"

    print("KERNEL_OK")
</pallas_src>

<mosaic_0001>
module attributes {stable_mosaic.version = 11 : i64} {
  func.func @_autoencoder_kernel(%arg0: i32, %arg1: memref<8x256xf32, #tpu.memory_space<vmem>>, %arg2: memref<256x1152xbf16, #tpu.memory_space<vmem>>, %arg3: memref<512x512xbf16, #tpu.memory_space<vmem>>, %arg4: memref<128x256xbf16, #tpu.memory_space<vmem>>, %arg5: memref<1x1920xf32, #tpu.memory_space<vmem>>, %arg6: memref<8x256xf32, #tpu.memory_space<vmem>>, %arg7: memref<8x128xf32, #tpu.memory_space<vmem>>) attributes {dimension_semantics = [#tpu.dimension_semantics<parallel>], iteration_bounds = array<i64: 1>, scalar_prefetch = 0 : i64, scratch_operands = 0 : i64, tpu.core_type = #tpu.core_type<tc>, window_params = [{transform_indices = @transform_0, window_bounds = array<i64: 8, 256>}, {pipeline_mode = #tpu.pipeline_mode<synchronous>, transform_indices = @transform_1, window_bounds = array<i64: 256, 1152>}, {pipeline_mode = #tpu.pipeline_mode<synchronous>, transform_indices = @transform_2, window_bounds = array<i64: 512, 512>}, {pipeline_mode = #tpu.pipeline_mode<synchronous>, transform_indices = @transform_3, window_bounds = array<i64: 128, 256>}, {pipeline_mode = #tpu.pipeline_mode<synchronous>, transform_indices = @transform_4, window_bounds = array<i64: 1, 1920>}, {transform_indices = @transform_5, window_bounds = array<i64: 8, 256>}, {transform_indices = @transform_6, window_bounds = array<i64: 8, 128>}]} {
    %c0 = arith.constant 0 : index
    %c0_0 = arith.constant 0 : index
    %0 = vector.load %arg1[%c0, %c0_0] : memref<8x256xf32, #tpu.memory_space<vmem>>, vector<8x256xf32>
    %c0_1 = arith.constant 0 : index
    %c0_2 = arith.constant 0 : index
    %1 = vector.load %arg2[%c0_1, %c0_2] : memref<256x1152xbf16, #tpu.memory_space<vmem>>, vector<256x512xbf16>
    %2 = arith.truncf %0 : vector<8x256xf32> to vector<8x256xbf16>
    %cst = arith.constant dense<0.000000e+00> : vector<8x512xf32>
    %3 = tpu.matmul %2, %1, %cst {dimension_numbers = #tpu.dot_dimension_numbers<[1], [0], [0], [1], [0, 0, 1, 1], [], []>} : vector<8x256xbf16>, vector<256x512xbf16>, vector<8x512xf32> -> vector<8x512xf32>
    %c0_3 = arith.constant 0 : index
    %c0_4 = arith.constant 0 : index
    %4 = vector.load %arg5[%c0_3, %c0_4] : memref<1x1920xf32, #tpu.memory_space<vmem>>, vector<1x512xf32>
    %5 = vector.broadcast %4 : vector<1x512xf32> to vector<8x512xf32>
    %6 = arith.addf %3, %5 : vector<8x512xf32>
    %cst_5 = arith.constant 0.000000e+00 : f32
    %7 = vector.broadcast %cst_5 : f32 to vector<8x512xf32>
    %8 = arith.maximumf %6, %7 : vector<8x512xf32>
    %c0_6 = arith.constant 0 : index
    %c0_7 = arith.constant 0 : index
    %9 = vector.load %arg3[%c0_6, %c0_7] : memref<512x512xbf16, #tpu.memory_space<vmem>>, vector<512x256xbf16>
    %10 = arith.truncf %8 : vector<8x512xf32> to vector<8x512xbf16>
    %cst_8 = arith.constant dense<0.000000e+00> : vector<8x256xf32>
    %11 = tpu.matmul %10, %9, %cst_8 {dimension_numbers = #tpu.dot_dimension_numbers<[1], [0], [0], [1], [0, 0, 1, 1], [], []>} : vector<8x512xbf16>, vector<512x256xbf16>, vector<8x256xf32> -> vector<8x256xf32>
    %c0_9 = arith.constant 0 : index
    %c512 = arith.constant 512 : index
    %12 = vector.load %arg5[%c0_9, %c512] : memref<1x1920xf32, #tpu.memory_space<vmem>>, vector<1x256xf32>
    %13 = vector.broadcast %12 : vector<1x256xf32> to vector<8x256xf32>
    %14 = arith.addf %11, %13 : vector<8x256xf32>
    %cst_10 = arith.constant 0.000000e+00 : f32
    %15 = vector.broadcast %cst_10 : f32 to vector<8x256xf32>
    %16 = arith.maximumf %14, %15 : vector<8x256xf32>
    %c0_11 = arith.constant 0 : index
    %c512_12 = arith.constant 512 : index
    %17 = vector.load %arg2[%c0_11, %c512_12] : memref<256x1152xbf16, #tpu.memory_space<vmem>>, vector<256x128xbf16>
    %18 = arith.truncf %16 : vector<8x256xf32> to vector<8x256xbf16>
    %cst_13 = arith.constant dense<0.000000e+00> : vector<8x128xf32>
    %19 = tpu.matmul %18, %17, %cst_13 {dimension_numbers = #tpu.dot_dimension_numbers<[1], [0], [0], [1], [0, 0, 1, 1], [], []>} : vector<8x256xbf16>, vector<256x128xbf16>, vector<8x128xf32> -> vector<8x128xf32>
    %c0_14 = arith.constant 0 : index
    %c768 = arith.constant 768 : index
    %20 = vector.load %arg5[%c0_14, %c768] : memref<1x1920xf32, #tpu.memory_space<vmem>>, vector<1x128xf32>
    %21 = vector.broadcast %20 : vector<1x128xf32> to vector<8x128xf32>
    %22 = arith.addf %19, %21 : vector<8x128xf32>
    %c0_15 = arith.constant 0 : index
    %c0_16 = arith.constant 0 : index
    %23 = vector.load %arg7[%c0_15, %c0_16] : memref<8x128xf32, #tpu.memory_space<vmem>>, vector<8x128xf32>
    tpu.vector_store %arg7[%c0_15, %c0_16], %22 {strides = array<i32>} : memref<8x128xf32, #tpu.memory_space<vmem>>, vector<8x128xf32>,
    %c0_17 = arith.constant 0 : index
    %c0_18 = arith.constant 0 : index
    %24 = vector.load %arg4[%c0_17, %c0_18] : memref<128x256xbf16, #tpu.memory_space<vmem>>, vector<128x256xbf16>
    %25 = arith.truncf %22 : vector<8x128xf32> to vector<8x128xbf16>
    %cst_19 = arith.constant dense<0.000000e+00> : vector<8x256xf32>
    %26 = tpu.matmul %25, %24, %cst_19 {dimension_numbers = #tpu.dot_dimension_numbers<[1], [0], [0], [1], [0, 0, 1, 1], [], []>} : vector<8x128xbf16>, vector<128x256xbf16>, vector<8x256xf32> -> vector<8x256xf32>
    %c0_20 = arith.constant 0 : index
    %c896 = arith.constant 896 : index
    %27 = vector.load %arg5[%c0_20, %c896] : memref<1x1920xf32, #tpu.memory_space<vmem>>, vector<1x256xf32>
    %28 = vector.broadcast %27 : vector<1x256xf32> to vector<8x256xf32>
    %29 = arith.addf %26, %28 : vector<8x256xf32>
    %cst_21 = arith.constant 0.000000e+00 : f32
    %30 = vector.broadcast %cst_21 : f32 to vector<8x256xf32>
    %31 = arith.maximumf %29, %30 : vector<8x256xf32>
    %c0_22 = arith.constant 0 : index
    %c640 = arith.constant 640 : index
    %32 = vector.load %arg2[%c0_22, %c640] : memref<256x1152xbf16, #tpu.memory_space<vmem>>, vector<256x512xbf16>
    %33 = arith.truncf %31 : vector<8x256xf32> to vector<8x256xbf16>
    %cst_23 = arith.constant dense<0.000000e+00> : vector<8x512xf32>
    %34 = tpu.matmul %33, %32, %cst_23 {dimension_numbers = #tpu.dot_dimension_numbers<[1], [0], [0], [1], [0, 0, 1, 1], [], []>} : vector<8x256xbf16>, vector<256x512xbf16>, vector<8x512xf32> -> vector<8x512xf32>
    %c0_24 = arith.constant 0 : index
    %c1152 = arith.constant 1152 : index
    %35 = vector.load %arg5[%c0_24, %c1152] : memref<1x1920xf32, #tpu.memory_space<vmem>>, vector<1x512xf32>
    %36 = vector.broadcast %35 : vector<1x512xf32> to vector<8x512xf32>
    %37 = arith.addf %34, %36 : vector<8x512xf32>
    %cst_25 = arith.constant 0.000000e+00 : f32
    %38 = vector.broadcast %cst_25 : f32 to vector<8x512xf32>
    %39 = arith.maximumf %37, %38 : vector<8x512xf32>
    %c0_26 = arith.constant 0 : index
    %c256 = arith.constant 256 : index
    %40 = vector.load %arg3[%c0_26, %c256] : memref<512x512xbf16, #tpu.memory_space<vmem>>, vector<512x256xbf16>
    %41 = arith.truncf %39 : vector<8x512xf32> to vector<8x512xbf16>
    %cst_27 = arith.constant dense<0.000000e+00> : vector<8x256xf32>
    %42 = tpu.matmul %41, %40, %cst_27 {dimension_numbers = #tpu.dot_dimension_numbers<[1], [0], [0], [1], [0, 0, 1, 1], [], []>} : vector<8x512xbf16>, vector<512x256xbf16>, vector<8x256xf32> -> vector<8x256xf32>
    %c0_28 = arith.constant 0 : index
    %c1664 = arith.constant 1664 : index
    %43 = vector.load %arg5[%c0_28, %c1664] : memref<1x1920xf32, #tpu.memory_space<vmem>>, vector<1x256xf32>
    %44 = vector.broadcast %43 : vector<1x256xf32> to vector<8x256xf32>
    %45 = arith.addf %42, %44 : vector<8x256xf32>
    %c0_29 = arith.constant 0 : index
    %c0_30 = arith.constant 0 : index
    %46 = vector.load %arg6[%c0_29, %c0_30] : memref<8x256xf32, #tpu.memory_space<vmem>>, vector<8x256xf32>
    tpu.vector_store %arg6[%c0_29, %c0_30], %45 {strides = array<i32>} : memref<8x256xf32, #tpu.memory_space<vmem>>, vector<8x256xf32>,
    return
  }
  func.func @transform_0(%arg0: i32) -> (i32, i32) {
    %c0_i32 = arith.constant 0 : i32
    %c0_i32_0 = arith.constant 0 : i32
    return %arg0, %c0_i32 : i32, i32
  }
  func.func @transform_1(%arg0: i32) -> (i32, i32) {
    %c0_i32 = arith.constant 0 : i32
    %c0_i32_0 = arith.constant 0 : i32
    %c0_i32_1 = arith.constant 0 : i32
    return %c0_i32, %c0_i32_0 : i32, i32
  }
  func.func @transform_2(%arg0: i32) -> (i32, i32) {
    %c0_i32 = arith.constant 0 : i32
    %c0_i32_0 = arith.constant 0 : i32
    %c0_i32_1 = arith.constant 0 : i32
    return %c0_i32, %c0_i32_0 : i32, i32
  }
  func.func @transform_3(%arg0: i32) -> (i32, i32) {
    %c0_i32 = arith.constant 0 : i32
    %c0_i32_0 = arith.constant 0 : i32
    %c0_i32_1 = arith.constant 0 : i32
    return %c0_i32, %c0_i32_0 : i32, i32
  }
  func.func @transform_4(%arg0: i32) -> (i32, i32) {
    %c0_i32 = arith.constant 0 : i32
    %c0_i32_0 = arith.constant 0 : i32
    %c0_i32_1 = arith.constant 0 : i32
    return %c0_i32, %c0_i32_0 : i32, i32
  }
  func.func @transform_5(%arg0: i32) -> (i32, i32) {
    %c0_i32 = arith.constant 0 : i32
    %c0_i32_0 = arith.constant 0 : i32
    return %arg0, %c0_i32 : i32, i32
  }
  func.func @transform_6(%arg0: i32) -> (i32, i32) {
    %c0_i32 = arith.constant 0 : i32
    %c0_i32_0 = arith.constant 0 : i32
    return %arg0, %c0_i32 : i32, i32
  }
}

</mosaic_0001>

<bundles_post_ra>
// kernel: mutation_autoencoder_forward.1
= control target key start
LH: loop header
LB: loop body
LE: loop exit
PB: predicated region body
PF: predicated region fallthrough
CT: control target
= control target key end

     0   :  { %12 = vsyncpa [#allocation3], 0  ;;  %s4175_s0 = inlined_call_operand.hbm [shape: f32[8,256], index: 0, kind: input, shape index: {}]   ;;  %s4176_s1 = inlined_call_operand.hbm [shape: bf16[256,1152], index: 1, kind: input, shape index: {}]   ;;  %s4177_s2 = inlined_call_operand.hbm [shape: bf16[512,512], index: 2, kind: input, shape index: {}]   ;;  %s4178_s3 = inlined_call_operand.hbm [shape: bf16[128,256], index: 3, kind: input, shape index: {}]   ;;  %s4179_s4 = inlined_call_operand.hbm [shape: f32[1,1920], index: 4, kind: input, shape index: {}]   ;;  %s4180_s5 = inlined_call_operand.hbm [shape: f32[8,256], index: 5, kind: output, shape index: {0}]   ;;  %s4181_s6 = inlined_call_operand.hbm [shape: f32[8,128], index: 6, kind: output, shape index: {1}]  }
   0x1   :  { %13 = vsyncpa [#allocation6], 0 }
   0x2   :  { %14 = vsyncpa [#allocation9], 0 }
   0x3   :  { %15 = vsyncpa [#allocation4], 0  ;;  %s32_s23 = sshll.u32 %s4176_s1, 4  ;;  %s33_s23 = int_to_ptr.hbm [resolvable:$true] %s32_s23 }
   0x4   :  { %16 = vsyncpa [#allocation13], 0  ;;  %s4067_s24 = smov [#allocation5]   ;;  %s58_s28 = sshll.u32 %s4178_s3, 4  ;;  %s59_s28 = int_to_ptr.hbm [resolvable:$true] %s58_s28 }
   0x5   :  { %s34_s25 = sshll.u32 %s4067_s24, 4  ;;  %s4068_s29 = smov 576   ;;  %s35_s25 = int_to_ptr.vmem [resolvable:$true] %s34_s25 }
   0x6   :  { %s4069_s30 = smov 36   ;;  %s4070_s7 = smov [#allocation8]  }
   0x7   :  { %40 = dma.hbm_to_vmem [thread:$0]  %s33_s23, 18432, %s35_s25, [#allocation6], %s4068_s29, %s4068_s29, %s4069_s30  }
   0x8   :  { %s60_s8 = sshll.u32 %s4070_s7, 4  ;;  %s4071_s9 = smov 128   ;;  %s61_s8 = int_to_ptr.vmem [resolvable:$true] %s60_s8 }
   0x9   :  { %s4072_s10 = smov 8   ;;  %s22_s12 = sshll.u32 %s4175_s0, 4  ;;  %s23_s12 = int_to_ptr.hbm [resolvable:$true] %s22_s12 }
   0xa   :  { %66 = dma.hbm_to_vmem [thread:$0]  %s59_s28, 2048, %s61_s8, [#allocation9], %s4071_s9, %s4071_s9, %s4072_s10  }
   0xb   :  { %s4073_s13 = smov [#allocation2]   ;;  %s45_s16 = sshll.u32 %s4177_s2, 4  ;;  %s46_s16 = int_to_ptr.hbm [resolvable:$true] %s45_s16 }
   0xc   :  { %s24_s14 = sshll.u32 %s4073_s13, 4  ;;  %s4074_s17 = smov [#allocation7]   ;;  %s25_s14 = int_to_ptr.vmem [resolvable:$true] %s24_s14 }
   0xd   :  { %27 = dma.hbm_to_vmem [thread:$0]  %s23_s12, 256, %s25_s14, [#allocation3]  }
   0xe   :  { %s47_s18 = sshll.u32 %s4074_s17, 4  ;;  %s4075_s19 = smov 256   ;;  %s48_s18 = int_to_ptr.vmem [resolvable:$true] %s47_s18 }
   0xf   :  { %s4076_s20 = smov 16   ;;  %s72_s0 = sshll.u32 %s4179_s4, 4  ;;  %s73_s0 = int_to_ptr.hbm [resolvable:$true] %s72_s0 }
  0x10   :  { %53 = dma.hbm_to_vmem [thread:$0]  %s46_s16, 16384, %s48_s18, [#allocation6], %s4075_s19, %s4075_s19, %s4076_s20  }
  0x11   :  { %s4077_s23 = smov [#allocation10]  }
  0x12   :  { %s74_s24 = sshll.u32 %s4077_s23, 4  ;;  %s75_s24 = int_to_ptr.vmem [resolvable:$true] %s74_s24 }
  0x13   :  { %77 = dma.hbm_to_vmem [thread:$0]  %s73_s0, 240, %s75_s24, [#allocation9]  }
  0x14   :  { %4057 = dma.done.wait [#allocation3], 256  }
  0x15   :  { %4058 = vsyncadd [#allocation3], 4294967040 }
  0x16   :  { %4059 = dma.done.wait [#allocation6], 34816  }
  0x17   :  { %4060 = vsyncadd [#allocation6], 4294932480 }
  0x18   :  { %4061 = dma.done.wait [#allocation9], 2288  }
  0x19   :  { %4062 = vsyncadd [#allocation9], 4294965008  ;;  %v2549_v0 = vld [vmem:[#allocation5 + $0x1f8] sm:$0xf]  ;;  %v3617_v1 = vld [vmem:[#allocation5 + $0x218] sm:$0xf0] }
  0x1a   :  { %v2677_v2 = vld [vmem:[#allocation5 + $0x438] sm:$0xf]  ;;  %v2550_v3 = vor.u32 %v3617_v1, %v2549_v0  ;;  %v3649_v4 = vld [vmem:[#allocation5 + $0x458] sm:$0xf0]  ;;  %v2551_v6 = vld [vmem:[#allocation5 + $0x21c] sm:$0xf0] }
  0x1b   :  { %v3615_v5 = vld [vmem:[#allocation5 + $0x1fc] sm:$0xf]  ;;  %v2678_v7 = vor.u32 %v3649_v4, %v2677_v2  ;;  %v2679_v10 = vld [vmem:[#allocation5 + $0x45c] sm:$0xf0]  ;;  %v2533_v11 = vld [vmem:[#allocation5 + $0x1b0] sm:$0xf] }
  0x1c   :  { %v2554_v8 = vor.u32 %v3615_v5, %v2551_v6  ;;  %v3647_v9 = vld [vmem:[#allocation5 + $0x43c] sm:$0xf]  ;;  %496 = vmatpush.bf16.msra.mxu0 %v2550_v3  ;;  %v3613_v13 = vld [vmem:[#allocation5 + $0x1d0] sm:$0xf0]  ;;  %v2661_v14 = vld [vmem:[#allocation5 + $0x3f0] sm:$0xf] }
  0x1d   :  { %v2682_v12 = vor.u32 %v3647_v9, %v2679_v10  ;;  %v3645_v15 = vld [vmem:[#allocation5 + $0x410] sm:$0xf0]  ;;  %509 = vmatpush.bf16.msra.mxu1 %v2678_v7  ;;  %v2534_v16 = vor.u32 %v3613_v13, %v2533_v11  ;;  %v2535_v19 = vld [vmem:[#allocation5 + $0x1d4] sm:$0xf0]  ;;  %v2517_v23 = vld [vmem:[#allocation5 + $0x168] sm:$0xf] }
  0x1e   :  { %522 = vmatpush.bf16.msra.mxu2 %v2554_v8  ;;  %v2662_v17 = vor.u32 %v3645_v15, %v2661_v14  ;;  %v3611_v18 = vld [vmem:[#allocation5 + $0x1b4] sm:$0xf]  ;;  %v2663_v22 = vld [vmem:[#allocation5 + $0x414] sm:$0xf0]  ;;  %v3609_v24 = vld [vmem:[#allocation5 + $0x188] sm:$0xf0] }
  0x1f   :  { %v3643_v20 = vld [vmem:[#allocation5 + $0x3f4] sm:$0xf]  ;;  %535 = vmatpush.bf16.msra.mxu3 %v2682_v12  ;;  %v2538_v21 = vor.u32 %v3611_v18, %v2535_v19  ;;  %v2645_v26 = vld [vmem:[#allocation5 + $0x3a8] sm:$0xf]  ;;  %v3641_v27 = vld [vmem:[#allocation5 + $0x3c8] sm:$0xf0]  ;;  %v2518_v29 = vor.u32 %v3609_v24, %v2517_v23 }
  0x20   :  { %v2666_v25 = vor.u32 %v3643_v20, %v2663_v22  ;;  %v3607_v28 = vld [vmem:[#allocation5 + $0x16c] sm:$0xf]  ;;  %497 = vmatpush.bf16.msra.mxu0 %v2534_v16  ;;  %v2519_v30 = vld [vmem:[#allocation5 + $0x18c] sm:$0xf0]  ;;  %v2646_v33 = vor.u32 %v3641_v27, %v2645_v26  ;;  %v2501_v35 = vld [vmem:[#allocation5 + $0x120] sm:$0xf] }
  0x21   :  { %v3639_v31 = vld [vmem:[#allocation5 + $0x3ac] sm:$0xf]  ;;  %v2647_v32 = vld [vmem:[#allocation5 + $0x3cc] sm:$0xf0]  ;;  %510 = vmatpush.bf16.msra.mxu1 %v2662_v17  ;;  %v2522_v34 = vor.u32 %v3607_v28, %v2519_v30  ;;  %v3605_v36 = vld [vmem:[#allocation5 + $0x140] sm:$0xf0] }
  0x22   :  { %523 = vmatpush.bf16.msra.mxu2 %v2538_v21  ;;  %v2629_v37 = vld [vmem:[#allocation5 + $0x360] sm:$0xf]  ;;  %v2650_v38 = vor.u32 %v3639_v31, %v2647_v32  ;;  %v3637_v39 = vld [vmem:[#allocation5 + $0x380] sm:$0xf0]  ;;  %v2503_v41 = vld [vmem:[#allocation5 + $0x144] sm:$0xf0]  ;;  %v2502_v44 = vor.u32 %v3605_v36, %v2501_v35 }
  0x23   :  { %536 = vmatpush.bf16.msra.mxu3 %v2666_v25  ;;  %v3603_v40 = vld [vmem:[#allocation5 + $0x124] sm:$0xf]  ;;  %v2631_v43 = vld [vmem:[#allocation5 + $0x384] sm:$0xf0]  ;;  %v2630_v45 = vor.u32 %v3637_v39, %v2629_v37  ;;  %v2485_v47 = vld [vmem:[#allocation5 + $0xd8] sm:$0xf] }
  0x24   :  { %v3635_v42 = vld [vmem:[#allocation5 + $0x364] sm:$0xf]  ;;  %498 = vmatpush.bf16.msra.mxu0 %v2518_v29  ;;  %v2506_v46 = vor.u32 %v3603_v40, %v2503_v41  ;;  %v3601_v48 = vld [vmem:[#allocation5 + $0xf8] sm:$0xf0]  ;;  %v2613_v49 = vld [vmem:[#allocation5 + $0x318] sm:$0xf] }
  0x25   :  { %511 = vmatpush.bf16.msra.mxu1 %v2646_v33  ;;  %v2634_v50 = vor.u32 %v3635_v42, %v2631_v43  ;;  %v3633_v51 = vld [vmem:[#allocation5 + $0x338] sm:$0xf0]  ;;  %v2487_v53 = vld [vmem:[#allocation5 + $0xfc] sm:$0xf0]  ;;  %v2486_v56 = vor.u32 %v3601_v48, %v2485_v47  ;;  %v2469_v59 = vld [vmem:[#allocation5 + $0x90] sm:$0xf] }
  0x26   :  { %524 = vmatpush.bf16.msra.mxu2 %v2522_v34  ;;  %v3599_v52 = vld [vmem:[#allocation5 + $0xdc] sm:$0xf]  ;;  %v2615_v55 = vld [vmem:[#allocation5 + $0x33c] sm:$0xf0]  ;;  %v2614_v57 = vor.u32 %v3633_v51, %v2613_v49  ;;  %v3597_v60 = vld [vmem:[#allocation5 + $0xb0] sm:$0xf0] }
  0x27   :  { %537 = vmatpush.bf16.msra.mxu3 %v2650_v38  ;;  %v3631_v54 = vld [vmem:[#allocation5 + $0x31c] sm:$0xf]  ;;  %v2490_v58 = vor.u32 %v3599_v52, %v2487_v53  ;;  %v2597_v61 = vld [vmem:[#allocation5 + $0x2d0] sm:$0xf]  ;;  %v3629_v63 = vld [vmem:[#allocation5 + $0x2f0] sm:$0xf0]  ;;  %v2470_v4 = vor.u32 %v3597_v60, %v2469_v59 }
  0x28   :  { %499 = vmatpush.bf16.msra.mxu0 %v2502_v44  ;;  %v2618_v62 = vor.u32 %v3631_v54, %v2615_v55  ;;  %v3595_v0 = vld [vmem:[#allocation5 + $0x94] sm:$0xf]  ;;  %v2471_v1 = vld [vmem:[#allocation5 + $0xb4] sm:$0xf0]  ;;  %v2598_v5 = vor.u32 %v3629_v63, %v2597_v61  ;;  %v2453_v7 = vld [vmem:[#allocation5 + $0x48] sm:$0xf] }
  0x29   :  { %512 = vmatpush.bf16.msra.mxu1 %v2630_v45  ;;  %v3627_v2 = vld [vmem:[#allocation5 + $0x2d4] sm:$0xf]  ;;  %v2599_v3 = vld [vmem:[#allocation5 + $0x2f4] sm:$0xf0]  ;;  %v2474_v6 = vor.u32 %v3595_v0, %v2471_v1  ;;  %v3593_v8 = vld [vmem:[#allocation5 + $0x68] sm:$0xf0] }
  0x2a   :  { %525 = vmatpush.bf16.msra.mxu2 %v2506_v46  ;;  %v2581_v9 = vld [vmem:[#allocation5 + $0x288] sm:$0xf]  ;;  %v2602_v10 = vor.u32 %v3627_v2, %v2599_v3  ;;  %v3625_v11 = vld [vmem:[#allocation5 + $0x2a8] sm:$0xf0]  ;;  %v2455_v13 = vld [vmem:[#allocation5 + $0x6c] sm:$0xf0]  ;;  %v2454_v16 = vor.u32 %v3593_v8, %v2453_v7 }
  0x2b   :  { %538 = vmatpush.bf16.msra.mxu3 %v2634_v50  ;;  %v3591_v12 = vld [vmem:[#allocation5 + $0x4c] sm:$0xf]  ;;  %v2583_v15 = vld [vmem:[#allocation5 + $0x2ac] sm:$0xf0]  ;;  %v2437_v17 = vld [vmem:[#allocation5] sm:$0xf]  ;;  %v2582_v19 = vor.u32 %v3625_v11, %v2581_v9 }
  0x2c   :  { %500 = vmatpush.bf16.msra.mxu0 %v2486_v56  ;;  %v3623_v14 = vld [vmem:[#allocation5 + $0x28c] sm:$0xf]  ;;  %v3589_v18 = vld [vmem:[#allocation5 + $0x20] sm:$0xf0]  ;;  %v2458_v20 = vor.u32 %v3591_v12, %v2455_v13  ;;  %v2565_v21 = vld [vmem:[#allocation5 + $0x240] sm:$0xf] }
  0x2d   :  { %513 = vmatpush.bf16.msra.mxu1 %v2614_v57  ;;  %v3621_v22 = vld [vmem:[#allocation5 + $0x260] sm:$0xf0]  ;;  %v2586_v24 = vor.u32 %v3623_v14, %v2583_v15  ;;  %v2439_v25 = vld [vmem:[#allocation5 + $0x24] sm:$0xf0]  ;;  %v2557_v28 = vld [vmem:[#allocation5 + $0x200] sm:$0xf]  ;;  %v2438_v31 = vor.u32 %v3589_v18, %v2437_v17 }
  0x2e   :  { %526 = vmatpush.bf16.msra.mxu2 %v2490_v58  ;;  %v3587_v23 = vld [vmem:[#allocation5 + $0x4] sm:$0xf]  ;;  %v2567_v27 = vld [vmem:[#allocation5 + $0x264] sm:$0xf0]  ;;  %v2685_v30 = vld [vmem:[#allocation5 + $0x440] sm:$0xf]  ;;  %v2566_v35 = vor.u32 %v3621_v22, %v2565_v21 }
  0x2f   :  { %539 = vmatpush.bf16.msra.mxu3 %v2618_v62  ;;  %v3619_v26 = vld [vmem:[#allocation5 + $0x244] sm:$0xf]  ;;  %v2559_v34 = vld [vmem:[#allocation5 + $0x224] sm:$0xf0]  ;;  %v2442_v36 = vor.u32 %v3587_v23, %v2439_v25  ;;  %v98_v39 = vld [vmem:[#allocation2] sm:$0xff]  ;;  %s4078_s2 = smov [#allocation12]  }
  0x30   :  { %501 = vmatpush.bf16.msra.mxu0 %v2470_v4  ;;  %v3618_v29 = vld [vmem:[#allocation5 + $0x220] sm:$0xf0]  ;;  %v2687_v38 = vld [vmem:[#allocation5 + $0x464] sm:$0xf0]  ;;  %v2570_v40 = vor.u32 %v3619_v26, %v2567_v27  ;;  %v99_v42 = vld [vmem:[#allocation2 + $0x8] sm:$0xff]  ;;  %v4130_v49 = vpack.c.bf16 %v98_v39, %v98_v39  ;;  %s2416_s4 = sshll.u32 %s4078_s2, 4  ;;  %s2417_s4 = int_to_ptr.vmem [resolvable:$true] %s2416_s4 }
  0x31   :  { %514 = vmatpush.bf16.msra.mxu1 %v2598_v5  ;;  %v3650_v32 = vld [vmem:[#allocation5 + $0x460] sm:$0xf0]  ;;  %v2558_v41 = vor.u32 %v3618_v29, %v2557_v28  ;;  %v2541_v45 = vld [vmem:[#allocation5 + $0x1b8] sm:$0xf]  ;;  %v3614_v46 = vld [vmem:[#allocation5 + $0x1d8] sm:$0xf0]  ;;  %v4132_v53 = vpack.c.bf16 %v99_v42, %v99_v42 }
  0x32   :  { %527 = vmatpush.bf16.msra.mxu2 %v2474_v6  ;;  %v3616_v33 = vld [vmem:[#allocation5 + $0x204] sm:$0xf]  ;;  %v2686_v43 = vor.u32 %v3650_v32, %v2685_v30  ;;  %v2669_v47 = vld [vmem:[#allocation5 + $0x3f8] sm:$0xf]  ;;  %v3646_v50 = vld [vmem:[#allocation5 + $0x418] sm:$0xf0]  ;;  %v2542_v56 = vor.u32 %v3614_v46, %v2541_v45 }
  0x33   :  { %540 = vmatpush.bf16.msra.mxu3 %v2602_v10  ;;  %v3648_v37 = vld [vmem:[#allocation5 + $0x444] sm:$0xf]  ;;  %v2562_v44 = vor.u32 %v3616_v33, %v2559_v34  ;;  %v3612_v51 = vld [vmem:[#allocation5 + $0x1bc] sm:$0xf]  ;;  %v2543_v52 = vld [vmem:[#allocation5 + $0x1dc] sm:$0xf0]  ;;  %v2670_v57 = vor.u32 %v3646_v50, %v2669_v47 }
  0x34   :  { %502 = vmatpush.bf16.msra.mxu0 %v2454_v16  ;;  %v2690_v48 = vor.u32 %v3648_v37, %v2687_v38  ;;  %v3644_v54 = vld [vmem:[#allocation5 + $0x3fc] sm:$0xf]  ;;  %v2671_v55 = vld [vmem:[#allocation5 + $0x41c] sm:$0xf0]  ;;  %v2546_v58 = vor.u32 %v3612_v51, %v2543_v52  ;;  %v2525_v59 = vld [vmem:[#allocation5 + $0x170] sm:$0xf] }
  0x35   :  { %515 = vmatpush.bf16.msra.mxu1 %v2582_v19  ;;  %v3610_v60 = vld [vmem:[#allocation5 + $0x190] sm:$0xf0]  ;;  %v2653_v61 = vld [vmem:[#allocation5 + $0x3b0] sm:$0xf]  ;;  %v2674_v62 = vor.u32 %v3644_v54, %v2671_v55  ;;  %v2527_v1 = vld [vmem:[#allocation5 + $0x194] sm:$0xf0] }
  0x36   :  { %528 = vmatpush.bf16.msra.mxu2 %v2458_v20  ;;  %v3642_v63 = vld [vmem:[#allocation5 + $0x3d0] sm:$0xf0]  ;;  %v2655_v3 = vld [vmem:[#allocation5 + $0x3d4] sm:$0xf0]  ;;  %v2526_v4 = vor.u32 %v3610_v60, %v2525_v59  ;;  %v2509_v7 = vld [vmem:[#allocation5 + $0x128] sm:$0xf] }
  0x37   :  { %541 = vmatpush.bf16.msra.mxu3 %v2586_v24  ;;  %v3608_v0 = vld [vmem:[#allocation5 + $0x174] sm:$0xf]  ;;  %v2654_v5 = vor.u32 %v3642_v63, %v2653_v61  ;;  %v3606_v8 = vld [vmem:[#allocation5 + $0x148] sm:$0xf0]  ;;  %v2637_v9 = vld [vmem:[#allocation5 + $0x368] sm:$0xf] }
  0x38   :  { %503 = vmatpush.bf16.msra.mxu0 %v2438_v31  ;;  %v3640_v2 = vld [vmem:[#allocation5 + $0x3b4] sm:$0xf]  ;;  %v2530_v6 = vor.u32 %v3608_v0, %v2527_v1  ;;  %v3638_v11 = vld [vmem:[#allocation5 + $0x388] sm:$0xf0]  ;;  %v2511_v13 = vld [vmem:[#allocation5 + $0x14c] sm:$0xf0]  ;;  %v2510_v16 = vor.u32 %v3606_v8, %v2509_v7 }
  0x39   :  { %516 = vmatpush.bf16.msra.mxu1 %v2566_v35  ;;  %v2658_v10 = vor.u32 %v3640_v2, %v2655_v3  ;;  %v3604_v12 = vld [vmem:[#allocation5 + $0x12c] sm:$0xf]  ;;  %v2639_v15 = vld [vmem:[#allocation5 + $0x38c] sm:$0xf0]  ;;  %v2638_v17 = vor.u32 %v3638_v11, %v2637_v9  ;;  %v2493_v19 = vld [vmem:[#allocation5 + $0xe0] sm:$0xf] }
  0x3a   :  { %529 = vmatpush.bf16.msra.mxu2 %v2442_v36  ;;  %v3636_v14 = vld [vmem:[#allocation5 + $0x36c] sm:$0xf]  ;;  %v2514_v18 = vor.u32 %v3604_v12, %v2511_v13  ;;  %v3602_v20 = vld [vmem:[#allocation5 + $0x100] sm:$0xf0]  ;;  %v2621_v21 = vld [vmem:[#allocation5 + $0x320] sm:$0xf] }
  0x3b   :  { %542 = vmatpush.bf16.msra.mxu3 %v2570_v40  ;;  %504 = vmatmul.bf16.vlgmr.msra.gmra.mxu0 %v4130_v49  ;;  %v2642_v22 = vor.u32 %v3636_v14, %v2639_v15  ;;  %v3634_v23 = vld [vmem:[#allocation5 + $0x340] sm:$0xf0]  ;;  %v2495_v25 = vld [vmem:[#allocation5 + $0x104] sm:$0xf0]  ;;  %v2494_v28 = vor.u32 %v3602_v20, %v2493_v19  ;;  %v2477_v31 = vld [vmem:[#allocation5 + $0x98] sm:$0xf] }
  0x3c   :  { %548 = vmatpush.bf16.msrb.mxu0 %v2558_v41  ;;  %517 = vmatmul.bf16.vlgmr.msra.gmra.mxu1 %v4132_v53  ;;  %v3600_v24 = vld [vmem:[#allocation5 + $0xe4] sm:$0xf]  ;;  %v2623_v27 = vld [vmem:[#allocation5 + $0x344] sm:$0xf0]  ;;  %v2622_v29 = vor.u32 %v3634_v23, %v2621_v21  ;;  %v3598_v32 = vld [vmem:[#allocation5 + $0xb8] sm:$0xf0] }
  0x3d   :  { %561 = vmatpush.bf16.msrb.mxu1 %v2686_v43  ;;  %530 = vmatmul.bf16.vlgmr.msra.gmra.mxu2 %v4130_v49  ;;  %v3632_v26 = vld [vmem:[#allocation5 + $0x324] sm:$0xf]  ;;  %v2498_v30 = vor.u32 %v3600_v24, %v2495_v25  ;;  %v2605_v33 = vld [vmem:[#allocation5 + $0x2d8] sm:$0xf]  ;;  %v3630_v35 = vld [vmem:[#allocation5 + $0x2f8] sm:$0xf0]  ;;  %v2478_v40 = vor.u32 %v3598_v32, %v2477_v31 }
  0x3e   :  { %574 = vmatpush.bf16.msrb.mxu2 %v2562_v44  ;;  %543 = vmatmul.bf16.vlgmr.msra.gmra.mxu3 %v4132_v53  ;;  %v2626_v34 = vor.u32 %v3632_v26, %v2623_v27  ;;  %v3596_v36 = vld [vmem:[#allocation5 + $0x9c] sm:$0xf]  ;;  %v2479_v37 = vld [vmem:[#allocation5 + $0xbc] sm:$0xf0]  ;;  %v2461_v41 = vld [vmem:[#allocation5 + $0x50] sm:$0xf]  ;;  %v2606_v42 = vor.u32 %v3630_v35, %v2605_v33 }
  0x3f   :  { %587 = vmatpush.bf16.msrb.mxu3 %v2690_v48  ;;  %v3628_v38 = vld [vmem:[#allocation5 + $0x2dc] sm:$0xf]  ;;  %v2607_v39 = vld [vmem:[#allocation5 + $0x2fc] sm:$0xf0]  ;;  %v2482_v43 = vor.u32 %v3596_v36, %v2479_v37  ;;  %v3594_v44 = vld [vmem:[#allocation5 + $0x70] sm:$0xf0] }
  0x40   :  { %549 = vmatpush.bf16.msrb.mxu0 %v2542_v56  ;;  %v2589_v45 = vld [vmem:[#allocation5 + $0x290] sm:$0xf]  ;;  %v2610_v46 = vor.u32 %v3628_v38, %v2607_v39  ;;  %v3626_v47 = vld [vmem:[#allocation5 + $0x2b0] sm:$0xf0]  ;;  %v2463_v50 = vld [vmem:[#allocation5 + $0x74] sm:$0xf0]  ;;  %v2462_v54 = vor.u32 %v3594_v44, %v2461_v41 }
  0x41   :  { %562 = vmatpush.bf16.msrb.mxu1 %v2670_v57  ;;  %v3592_v48 = vld [vmem:[#allocation5 + $0x54] sm:$0xf]  ;;  %v2591_v52 = vld [vmem:[#allocation5 + $0x2b4] sm:$0xf0]  ;;  %v2445_v55 = vld [vmem:[#allocation5 + $0x8] sm:$0xf]  ;;  %v2590_v56 = vor.u32 %v3626_v47, %v2589_v45 }
  0x42   :  { %575 = vmatpush.bf16.msrb.mxu2 %v2546_v58  ;;  %v3624_v51 = vld [vmem:[#allocation5 + $0x294] sm:$0xf]  ;;  %v2466_v57 = vor.u32 %v3592_v48, %v2463_v50  ;;  %v3590_v58 = vld [vmem:[#allocation5 + $0x28] sm:$0xf0]  ;;  %v2573_v59 = vld [vmem:[#allocation5 + $0x248] sm:$0xf] }
  0x43   :  { %588 = vmatpush.bf16.msrb.mxu3 %v2674_v62  ;;  %v3622_v60 = vld [vmem:[#allocation5 + $0x268] sm:$0xf0]  ;;  %v2594_v61 = vor.u32 %v3624_v51, %v2591_v52  ;;  %v2447_v63 = vld [vmem:[#allocation5 + $0x2c] sm:$0xf0]  ;;  %v2749_v2 = vld [vmem:[#allocation7 + $0xe0] sm:$0xf] }
  0x44   :  { %550 = vmatpush.bf16.msrb.mxu0 %v2526_v4  ;;  %v3588_v62 = vld [vmem:[#allocation5 + $0xc] sm:$0xf]  ;;  %v2575_v1 = vld [vmem:[#allocation5 + $0x26c] sm:$0xf0]  ;;  %v2446_v4 = vor.u32 %v3590_v58, %v2445_v55  ;;  %v2574_v7 = vor.u32 %v3622_v60, %v2573_v59  ;;  %v2877_v11 = vld [vmem:[#allocation7 + $0x2e0] sm:$0xf] }
  0x45   :  { %563 = vmatpush.bf16.msrb.mxu1 %v2654_v5  ;;  %v3620_v0 = vld [vmem:[#allocation5 + $0x24c] sm:$0xf]  ;;  %v3666_v3 = vld [vmem:[#allocation7 + $0xec] sm:$0xf0]  ;;  %v2813_v5 = vld [vmem:[#allocation7 + $0x1e0] sm:$0xf]  ;;  %v2450_v8 = vor.u32 %v3588_v62, %v2447_v63 }
  0x46   :  { %576 = vmatpush.bf16.msrb.mxu2 %v2530_v6  ;;  %v3682_v6 = vld [vmem:[#allocation7 + $0x1ec] sm:$0xf0]  ;;  %v2578_v9 = vor.u32 %v3620_v0, %v2575_v1  ;;  %v2741_v13 = vld [vmem:[#allocation7 + $0xc0] sm:$0xf]  ;;  %v3665_v55 = vld [vmem:[#allocation7 + $0xe4] sm:$0xf] }
  0x47   :  { %589 = vmatpush.bf16.msrb.mxu3 %v2658_v10  ;;  %v2750_v10 = vor.u32 %v3666_v3, %v2749_v2  ;;  %v3698_v12 = vld [vmem:[#allocation7 + $0x2ec] sm:$0xf0]  ;;  %v2814_v15 = vor.u32 %v3682_v6, %v2813_v5  ;;  %v2869_v20 = vld [vmem:[#allocation7 + $0x2c0] sm:$0xf]  ;;  %v3663_v63 = vld [vmem:[#allocation7 + $0xc4] sm:$0xf] }
  0x48   :  { %551 = vmatpush.bf16.msrb.mxu0 %v2510_v16  ;;  %v3664_v14 = vld [vmem:[#allocation7 + $0xcc] sm:$0xf0]  ;;  %v2805_v16 = vld [vmem:[#allocation7 + $0x1c0] sm:$0xf]  ;;  %v2743_v0 = vld [vmem:[#allocation7 + $0xd0] sm:$0xf0] }
  0x49   :  { %564 = vmatpush.bf16.msrb.mxu1 %v2638_v17  ;;  %v3680_v17 = vld [vmem:[#allocation7 + $0x1cc] sm:$0xf0]  ;;  %v2742_v19 = vor.u32 %v3664_v14, %v2741_v13  ;;  %v2797_v25 = vld [vmem:[#allocation7 + $0x1a0] sm:$0xf]  ;;  %v2746_v1 = vor.u32 %v3663_v63, %v2743_v0  ;;  %v2815_v6 = vld [vmem:[#allocation7 + $0x1f0] sm:$0xf0] }
  0x4a   :  { %577 = vmatpush.bf16.msrb.mxu2 %v2514_v18  ;;  %v2878_v18 = vor.u32 %v3698_v12, %v2877_v11  ;;  %v3696_v21 = vld [vmem:[#allocation7 + $0x2cc] sm:$0xf0]  ;;  %v2806_v24 = vor.u32 %v3680_v17, %v2805_v16  ;;  %v2789_v32 = vld [vmem:[#allocation7 + $0x180] sm:$0xf]  ;;  %v2735_v12 = vld [vmem:[#allocation7 + $0xb0] sm:$0xf0] }
  0x4b   :  { %590 = vmatpush.bf16.msrb.mxu3 %v2642_v22  ;;  %v2733_v22 = vld [vmem:[#allocation7 + $0xa0] sm:$0xf]  ;;  %v3662_v23 = vld [vmem:[#allocation7 + $0xac] sm:$0xf0]  ;;  %v2870_v27 = vor.u32 %v3696_v21, %v2869_v20  ;;  %v3679_v16 = vld [vmem:[#allocation7 + $0x1c4] sm:$0xf] }
  0x4c   :  { %552 = vmatpush.bf16.msrb.mxu0 %v2494_v28  ;;  %v3678_v26 = vld [vmem:[#allocation7 + $0x1ac] sm:$0xf0]  ;;  %v2734_v28 = vor.u32 %v3662_v23, %v2733_v22  ;;  %v2717_v35 = vld [vmem:[#allocation7 + $0x60] sm:$0xf]  ;;  %v3659_v22 = vld [vmem:[#allocation7 + $0x84] sm:$0xf] }
  0x4d   :  { %565 = vmatpush.bf16.msrb.mxu1 %v2622_v29  ;;  %v2725_v29 = vld [vmem:[#allocation7 + $0x80] sm:$0xf]  ;;  %v2798_v31 = vor.u32 %v3678_v26, %v2797_v25  ;;  %v3676_v33 = vld [vmem:[#allocation7 + $0x18c] sm:$0xf0]  ;;  %v3671_v0 = vld [vmem:[#allocation7 + $0x144] sm:$0xf] }
  0x4e   :  { %578 = vmatpush.bf16.msrb.mxu2 %v2498_v30  ;;  %v3660_v30 = vld [vmem:[#allocation7 + $0x8c] sm:$0xf0]  ;;  %v2790_v36 = vor.u32 %v3676_v33, %v2789_v32  ;;  %v2781_v37 = vld [vmem:[#allocation7 + $0x160] sm:$0xf]  ;;  %s2418_s27 = sshll.u32 %s4181_s6, 4  ;;  %s4079_s6 = smov [#allocation11]   ;;  %s2419_s27 = int_to_ptr.hbm [resolvable:$true] %s2418_s27 }
  0x4f   :  { %591 = vmatpush.bf16.msrb.mxu3 %v2626_v34  ;;  %v2726_v34 = vor.u32 %v3660_v30, %v2725_v29  ;;  %v3674_v38 = vld [vmem:[#allocation7 + $0x16c] sm:$0xf0]  ;;  %v2709_v39 = vld [vmem:[#allocation7 + $0x40] sm:$0xf]  ;;  %v3677_v29 = vld [vmem:[#allocation7 + $0x1a4] sm:$0xf] }
  0x50   :  { %553 = vmatpush.bf16.msrb.mxu0 %v2478_v40  ;;  %v3656_v40 = vld [vmem:[#allocation7 + $0x4c] sm:$0xf0]  ;;  %v2782_v41 = vor.u32 %v3674_v38, %v2781_v37  ;;  %v2701_v45 = vld [vmem:[#allocation7 + $0x20] sm:$0xf]  ;;  %v2799_v30 = vld [vmem:[#allocation7 + $0x1b0] sm:$0xf0] }
  0x51   :  { %566 = vmatpush.bf16.msrb.mxu1 %v2606_v42  ;;  %v2773_v42 = vld [vmem:[#allocation7 + $0x140] sm:$0xf]  ;;  %v2710_v44 = vor.u32 %v3656_v40, %v2709_v39  ;;  %v3670_v50 = vld [vmem:[#allocation7 + $0x12c] sm:$0xf0]  ;;  %v2791_v40 = vld [vmem:[#allocation7 + $0x190] sm:$0xf0] }
  0x52   :  { %579 = vmatpush.bf16.msrb.mxu2 %v2482_v43  ;;  %v3672_v43 = vld [vmem:[#allocation7 + $0x14c] sm:$0xf0]  ;;  %v2765_v48 = vld [vmem:[#allocation7 + $0x120] sm:$0xf]  ;;  %s2405_s28 = sshll.u32 %s4079_s6, 4  ;;  %s2407_s7 = sshll.u32 %s4180_s5, 4  ;;  %s2406_s28 = int_to_ptr.vmem [resolvable:$true] %s2405_s28  ;;  %s2408_s7 = int_to_ptr.hbm [resolvable:$true] %s2407_s7 }
  0x53   :  { %592 = vmatpush.bf16.msrb.mxu3 %v2610_v46  ;;  %v3654_v46 = vld [vmem:[#allocation7 + $0x2c] sm:$0xf0]  ;;  %v2774_v47 = vor.u32 %v3672_v43, %v2773_v42  ;;  %v2693_v52 = vld [vmem:[#allocation7] sm:$0xf] }
  0x54   :  { %554 = vmatpush.bf16.msrb.mxu0 %v2462_v54  ;;  %v2702_v51 = vor.u32 %v3654_v46, %v2701_v45  ;;  %v3652_v54 = vld [vmem:[#allocation7 + $0xc] sm:$0xf0]  ;;  %v2757_v58 = vld [vmem:[#allocation7 + $0x100] sm:$0xf]  ;;  %v2711_v46 = vld [vmem:[#allocation7 + $0x50] sm:$0xf0] }
  0x55   :  { %567 = vmatpush.bf16.msrb.mxu1 %v2590_v56  ;;  %v2766_v56 = vor.u32 %v3670_v50, %v2765_v48  ;;  %v3668_v59 = vld [vmem:[#allocation7 + $0x10c] sm:$0xf0]  ;;  %v2694_v60 = vor.u32 %v3652_v54, %v2693_v52  ;;  %v2941_v2 = vld [vmem:[#allocation7 + $0x3e0] sm:$0xf]  ;;  %v2783_v54 = vld [vmem:[#allocation7 + $0x170] sm:$0xf0] }
  0x56   :  { %580 = vmatpush.bf16.msrb.mxu2 %v2466_v57  ;;  %v2751_v57 = vld [vmem:[#allocation7 + $0xf0] sm:$0xf0]  ;;  %v2758_v62 = vor.u32 %v3668_v59, %v2757_v58  ;;  %v3714_v3 = vld [vmem:[#allocation7 + $0x3ec] sm:$0xf0]  ;;  %v2933_v14 = vld [vmem:[#allocation7 + $0x3c0] sm:$0xf] }
  0x57   :  { %593 = vmatpush.bf16.msrb.mxu3 %v2594_v61  ;;  %v2754_v61 = vor.u32 %v3665_v55, %v2751_v57  ;;  %v2942_v5 = vor.u32 %v3714_v3, %v2941_v2  ;;  %v2853_v20 = vld [vmem:[#allocation7 + $0x280] sm:$0xf]  ;;  %v3692_v21 = vld [vmem:[#allocation7 + $0x28c] sm:$0xf0]  ;;  %v3653_v59 = vld [vmem:[#allocation7 + $0x24] sm:$0xf] }
  0x58   :  { %555 = vmatpush.bf16.msrb.mxu0 %v2446_v4  ;;  %v3681_v4 = vld [vmem:[#allocation7 + $0x1e4] sm:$0xf]  ;;  %v2854_v23 = vor.u32 %v3692_v21, %v2853_v20  ;;  %v2925_v26 = vld [vmem:[#allocation7 + $0x3a0] sm:$0xf]  ;;  %v3690_v33 = vld [vmem:[#allocation7 + $0x26c] sm:$0xf0] }
  0x59   :  { %568 = vmatpush.bf16.msrb.mxu1 %v2574_v7  ;;  %v2818_v7 = vor.u32 %v3681_v4, %v2815_v6  ;;  %v2845_v32 = vld [vmem:[#allocation7 + $0x260] sm:$0xf]  ;;  %v3708_v38 = vld [vmem:[#allocation7 + $0x38c] sm:$0xf0]  ;;  %v3651_v6 = vld [vmem:[#allocation7 + $0x4] sm:$0xf] }
  0x5a   :  { %581 = vmatpush.bf16.msrb.mxu2 %v2450_v8  ;;  %v2861_v8 = vld [vmem:[#allocation7 + $0x2a0] sm:$0xf]  ;;  %v3688_v43 = vld [vmem:[#allocation7 + $0x24c] sm:$0xf0]  ;;  %v3695_v20 = vld [vmem:[#allocation7 + $0x2c4] sm:$0xf] }
  0x5b   :  { %594 = vmatpush.bf16.msrb.mxu3 %v2578_v9  ;;  %556 = vmatmul.bf16.vlgmr.msrb.gmra.mxu0 %v4130_v49  ;;  %v3694_v9 = vld [vmem:[#allocation7 + $0x2ac] sm:$0xf0]  ;;  %v2917_v37 = vld [vmem:[#allocation7 + $0x380] sm:$0xf]  ;;  %v2871_v21 = vld [vmem:[#allocation7 + $0x2d0] sm:$0xf0] }
  0x5c   :  { %998 = vmatpush.bf16.msra.mxu0 %v2750_v10  ;;  %569 = vmatmul.bf16.vlgmr.msrb.gmra.mxu1 %v4132_v53  ;;  %v3661_v10 = vld [vmem:[#allocation7 + $0xa4] sm:$0xf]  ;;  %v2862_v11 = vor.u32 %v3694_v9, %v2861_v8  ;;  %v2918_v39 = vor.u32 %v3708_v38, %v2917_v37  ;;  %v2837_v42 = vld [vmem:[#allocation7 + $0x240] sm:$0xf]  ;;  %v3706_v50 = vld [vmem:[#allocation7 + $0x36c] sm:$0xf0] }
  0x5d   :  { %1011 = vmatpush.bf16.msra.mxu1 %v2814_v15  ;;  %582 = vmatmul.bf16.vlgmr.msrb.gmra.mxu2 %v4130_v49  ;;  %v3658_v49 = vld [vmem:[#allocation7 + $0x6c] sm:$0xf0]  ;;  %v2738_v13 = vor.u32 %v3661_v10, %v2735_v12  ;;  %v2838_v45 = vor.u32 %v3688_v43, %v2837_v42  ;;  %v2909_v48 = vld [vmem:[#allocation7 + $0x360] sm:$0xf]  ;;  %v2695_v8 = vld [vmem:[#allocation7 + $0x10] sm:$0xf0] }
  0x5e   :  { %595 = vmatmul.bf16.vlgmr.msrb.gmra.mxu3 %v4132_v53  ;;  %1024 = vmatpush.bf16.msra.mxu2 %v2878_v18  ;;  %v2718_v53 = vor.u32 %v3658_v49, %v2717_v35  ;;  %v3712_v15 = vld [vmem:[#allocation7 + $0x3cc] sm:$0xf0]  ;;  %v2807_v18 = vld [vmem:[#allocation7 + $0x1d0] sm:$0xf0]  ;;  %v2846_v35 = vor.u32 %v3690_v33, %v2845_v32  ;;  %v2910_v52 = vor.u32 %v3706_v50, %v2909_v48  ;;  %v2829_v55 = vld [vmem:[#allocation7 + $0x220] sm:$0xf] }
  0x5f   :  { %1037 = vmatpush.bf16.msra.mxu3 %v2942_v5  ;;  %v2934_v17 = vor.u32 %v3712_v15, %v2933_v14  ;;  %v2719_v49 = vld [vmem:[#allocation7 + $0x70] sm:$0xf0]  ;;  %v3704_v63 = vld [vmem:[#allocation7 + $0x34c] sm:$0xf0]  ;;  %v2821_v4 = vld [vmem:[#allocation7 + $0x200] sm:$0xf] }
  0x60   :  { %999 = vmatpush.bf16.msra.mxu0 %v2742_v19  ;;  %v2810_v19 = vor.u32 %v3679_v16, %v2807_v18  ;;  %v3684_v5 = vld [vmem:[#allocation7 + $0x20c] sm:$0xf0]  ;;  %v3697_v9 = vld [vmem:[#allocation7 + $0x2e4] sm:$0xf]  ;;  %v2879_v10 = vld [vmem:[#allocation7 + $0x2f0] sm:$0xf0] }
  0x61   :  { %1012 = vmatpush.bf16.msra.mxu1 %v2806_v24  ;;  %v2727_v24 = vld [vmem:[#allocation7 + $0x90] sm:$0xf0]  ;;  %v2882_v12 = vor.u32 %v3697_v9, %v2879_v10  ;;  %v3702_v14 = vld [vmem:[#allocation7 + $0x32c] sm:$0xf0]  ;;  %v3669_v15 = vld [vmem:[#allocation7 + $0x124] sm:$0xf] }
  0x62   :  { %1025 = vmatpush.bf16.msra.mxu2 %v2870_v27  ;;  %v2730_v25 = vor.u32 %v3659_v22, %v2727_v24  ;;  %v3710_v27 = vld [vmem:[#allocation7 + $0x3ac] sm:$0xf0]  ;;  %v2885_v22 = vld [vmem:[#allocation7 + $0x300] sm:$0xf]  ;;  %v3693_v33 = vld [vmem:[#allocation7 + $0x2a4] sm:$0xf] }
  0x63   :  { %1038 = vmatpush.bf16.msra.mxu3 %v2934_v17  ;;  %v2767_v17 = vld [vmem:[#allocation7 + $0x130] sm:$0xf0]  ;;  %v3700_v24 = vld [vmem:[#allocation7 + $0x30c] sm:$0xf0]  ;;  %v3689_v50 = vld [vmem:[#allocation7 + $0x264] sm:$0xf] }
  0x64   :  { %1000 = vmatpush.bf16.msra.mxu0 %v2734_v28  ;;  %v2926_v28 = vor.u32 %v3710_v27, %v2925_v26  ;;  %v2770_v18 = vor.u32 %v3669_v15, %v2767_v17  ;;  %v2759_v26 = vld [vmem:[#allocation7 + $0x110] sm:$0xf0]  ;;  %v2886_v27 = vor.u32 %v3700_v24, %v2885_v22  ;;  %v3703_v9 = vld [vmem:[#allocation7 + $0x344] sm:$0xf] }
  0x65   :  { %1013 = vmatpush.bf16.msra.mxu1 %v2798_v31  ;;  %v2802_v31 = vor.u32 %v3677_v29, %v2799_v30  ;;  %v3713_v29 = vld [vmem:[#allocation7 + $0x3e4] sm:$0xf]  ;;  %v2943_v30 = vld [vmem:[#allocation7 + $0x3f0] sm:$0xf0] }
  0x66   :  { %1026 = vmatpush.bf16.msra.mxu2 %v2862_v11  ;;  %v2698_v11 = vor.u32 %v3651_v6, %v2695_v8  ;;  %v2946_v32 = vor.u32 %v3713_v29, %v2943_v30  ;;  %v2935_v37 = vld [vmem:[#allocation7 + $0x3d0] sm:$0xf0] }
  0x67   :  { %1039 = vmatpush.bf16.msra.mxu3 %v2926_v28  ;;  %v2831_v8 = vld [vmem:[#allocation7 + $0x230] sm:$0xf0] }
  0x68   :  { %1001 = vmatpush.bf16.msra.mxu0 %v2726_v34  ;;  %v3657_v34 = vld [vmem:[#allocation7 + $0x64] sm:$0xf]  ;;  %v2887_v24 = vld [vmem:[#allocation7 + $0x310] sm:$0xf0] }
  0x69   :  { %1014 = vmatpush.bf16.msra.mxu1 %v2790_v36  ;;  %v2722_v36 = vor.u32 %v3657_v34, %v2719_v49  ;;  %v2863_v34 = vld [vmem:[#allocation7 + $0x2b0] sm:$0xf0] }
  0x6a   :  { %1027 = vmatpush.bf16.msra.mxu2 %v2854_v23  ;;  %v2874_v23 = vor.u32 %v3695_v20, %v2871_v21  ;;  %v2895_v20 = vld [vmem:[#allocation7 + $0x330] sm:$0xf0] }
  0x6b   :  { %1040 = vmatpush.bf16.msra.mxu3 %v2918_v39 }
  0x6c   :  { %1002 = vmatpush.bf16.msra.mxu0 %v2718_v53  ;;  %v3675_v53 = vld [vmem:[#allocation7 + $0x184] sm:$0xf] }
  0x6d   :  { %1015 = vmatpush.bf16.msra.mxu1 %v2782_v41  ;;  %v2794_v41 = vor.u32 %v3675_v53, %v2791_v40  ;;  %v3691_v40 = vld [vmem:[#allocation7 + $0x284] sm:$0xf] }
  0x6e   :  { %1028 = vmatpush.bf16.msra.mxu2 %v2846_v35  ;;  %v2866_v35 = vor.u32 %v3693_v33, %v2863_v34 }
  0x6f   :  { %1041 = vmatpush.bf16.msra.mxu3 %v2910_v52 }
  0x70   :  { %1003 = vmatpush.bf16.msra.mxu0 %v2710_v44  ;;  %v3655_v44 = vld [vmem:[#allocation7 + $0x44] sm:$0xf] }
  0x71   :  { %1016 = vmatpush.bf16.msra.mxu1 %v2774_v47  ;;  %v2714_v47 = vor.u32 %v3655_v44, %v2711_v46  ;;  %v2927_v46 = vld [vmem:[#allocation7 + $0x3b0] sm:$0xf0] }
  0x72   :  { %1029 = vmatpush.bf16.msra.mxu2 %v2838_v45  ;;  %v3709_v45 = vld [vmem:[#allocation7 + $0x3a4] sm:$0xf] }
  0x73   :  { %v2930_v48 = vor.u32 %v3709_v45, %v2927_v46  ;;  %v3721_v45 = vld [vmem:[#allocation5 + $0x1e0] sm:$0xf0] }
  0x74   :  { %1004 = vmatpush.bf16.msra.mxu0 %v2702_v51  ;;  %v3673_v51 = vld [vmem:[#allocation7 + $0x164] sm:$0xf] }
  0x75   :  { %1017 = vmatpush.bf16.msra.mxu1 %v2766_v56  ;;  %v3686_v56 = vld [vmem:[#allocation7 + $0x22c] sm:$0xf0]  ;;  %v2786_v57 = vor.u32 %v3673_v51, %v2783_v54  ;;  %v2847_v51 = vld [vmem:[#allocation7 + $0x270] sm:$0xf0] }
  0x76   :  { %v2830_v58 = vor.u32 %v3686_v56, %v2829_v55  ;;  %v2850_v55 = vor.u32 %v3689_v50, %v2847_v51  ;;  %v2965_v50 = vld [vmem:[#allocation5 + $0x130] sm:$0xf] }
  0x78   :  { %1005 = vmatpush.bf16.msra.mxu0 %v2694_v60  ;;  %v2703_v60 = vld [vmem:[#allocation7 + $0x30] sm:$0xf0]  ;;  %1030 = vmatpush.bf16.msra.mxu2 %v2830_v58 }
  0x79   :  { %1018 = vmatpush.bf16.msra.mxu1 %v2758_v62  ;;  %v2706_v62 = vor.u32 %v3653_v59, %v2703_v60  ;;  %v3707_v59 = vld [vmem:[#allocation7 + $0x384] sm:$0xf]  ;;  %v2919_v60 = vld [vmem:[#allocation7 + $0x390] sm:$0xf0] }
  0x7c   :  { %1050 = vmatpush.bf16.msrb.mxu0 %v2754_v61  ;;  %v2901_v61 = vld [vmem:[#allocation7 + $0x340] sm:$0xf] }
  0x7d   :  { %1063 = vmatpush.bf16.msrb.mxu1 %v2818_v7  ;;  %v2902_v2 = vor.u32 %v3704_v63, %v2901_v61  ;;  %v2822_v7 = vor.u32 %v3684_v5, %v2821_v4  ;;  %v3705_v4 = vld [vmem:[#allocation7 + $0x364] sm:$0xf]  ;;  %v2911_v5 = vld [vmem:[#allocation7 + $0x370] sm:$0xf0] }
  0x7e   :  { %v2914_v6 = vor.u32 %v3705_v4, %v2911_v5 }
  0x7f   :  { %1042 = vmatpush.bf16.msra.mxu3 %v2902_v2  ;;  %1031 = vmatpush.bf16.msra.mxu2 %v2822_v7  ;;  %v3685_v7 = vld [vmem:[#allocation7 + $0x224] sm:$0xf] }
  0x80   :  { %1051 = vmatpush.bf16.msrb.mxu0 %v2746_v1  ;;  %v2775_v1 = vld [vmem:[#allocation7 + $0x150] sm:$0xf0] }
  0x81   :  { %1064 = vmatpush.bf16.msrb.mxu1 %v2810_v19  ;;  %v2778_v3 = vor.u32 %v3671_v0, %v2775_v1  ;;  %v4142_v19 = vld [vmem:[#allocation10] sm:$0xf]  ;;  %v3687_v0 = vld [vmem:[#allocation7 + $0x244] sm:$0xf]  ;;  %v2839_v1 = vld [vmem:[#allocation7 + $0x250] sm:$0xf0] }
  0x82   :  { %v169_v44 = vperm.slane %v4142_v19, 1  ;;  %v2842_v2 = vor.u32 %v3687_v0, %v2839_v1  ;;  %v3005_v0 = vld [vmem:[#allocation5 + $0x400] sm:$0xf] }
  0x83   :  { %1076 = vmatpush.bf16.msrb.mxu2 %v2882_v12  ;;  %v2903_v12 = vld [vmem:[#allocation7 + $0x350] sm:$0xf0] }
  0x84   :  { %1052 = vmatpush.bf16.msrb.mxu0 %v2738_v13  ;;  %v2893_v13 = vld [vmem:[#allocation7 + $0x320] sm:$0xf] }
  0x85   :  { %1065 = vmatpush.bf16.msrb.mxu1 %v2802_v31  ;;  %v2894_v16 = vor.u32 %v3702_v14, %v2893_v13  ;;  %v168_v31 = vperm.slane %v4142_v19, 0  ;;  %v3683_v13 = vld [vmem:[#allocation7 + $0x204] sm:$0xf]  ;;  %v2823_v14 = vld [vmem:[#allocation7 + $0x210] sm:$0xf0] }
  0x86   :  { %v2826_v21 = vor.u32 %v3683_v13, %v2823_v14  ;;  %v3715_v13 = vld [vmem:[#allocation5 + $0x30] sm:$0xf0]  ;;  %v2997_v14 = vld [vmem:[#allocation5 + $0x370] sm:$0xf] }
  0x87   :  { %1043 = vmatpush.bf16.msra.mxu3 %v2894_v16  ;;  %1077 = vmatpush.bf16.msrb.mxu2 %v2874_v23  ;;  %v2906_v16 = vor.u32 %v3703_v9, %v2903_v12  ;;  %v3699_v23 = vld [vmem:[#allocation7 + $0x304] sm:$0xf]  ;;  %v2949_v12 = vld [vmem:[#allocation5 + $0x10] sm:$0xf] }
  0x88   :  { %1053 = vmatpush.bf16.msrb.mxu0 %v2730_v25  ;;  %v3667_v25 = vld [vmem:[#allocation7 + $0x104] sm:$0xf] }
  0x89   :  { %1066 = vmatpush.bf16.msrb.mxu1 %v2794_v41  ;;  %v2762_v28 = vor.u32 %v3667_v25, %v2759_v26  ;;  %v2855_v41 = vld [vmem:[#allocation7 + $0x290] sm:$0xf0]  ;;  %v2890_v25 = vor.u32 %v3699_v23, %v2887_v24  ;;  %v170_v26 = vperm.slane %v4142_v19, 2  ;;  %v2989_v24 = vld [vmem:[#allocation5 + $0x2e0] sm:$0xf] }
  0x8a   :  { %v2858_v43 = vor.u32 %v3691_v40, %v2855_v41 }
  0x8b   :  { %1044 = vmatpush.bf16.msra.mxu3 %v2886_v27  ;;  %1078 = vmatpush.bf16.msrb.mxu2 %v2866_v35 }
  0x8c   :  { %1054 = vmatpush.bf16.msrb.mxu0 %v2722_v36  ;;  %v3711_v36 = vld [vmem:[#allocation7 + $0x3c4] sm:$0xf] }
  0x8d   :  { %1067 = vmatpush.bf16.msrb.mxu1 %v2786_v57  ;;  %v2938_v39 = vor.u32 %v3711_v36, %v2935_v37 }
  0x8f   :  { %1089 = vmatpush.bf16.msrb.mxu3 %v2946_v32  ;;  %1079 = vmatpush.bf16.msrb.mxu2 %v2858_v43  ;;  %v3722_v43 = vld [vmem:[#allocation5 + $0x228] sm:$0xf0] }
  0x90   :  { %1055 = vmatpush.bf16.msrb.mxu0 %v2714_v47 }
  0x91   :  { %1068 = vmatpush.bf16.msrb.mxu1 %v2778_v3 }
  0x93   :  { %1090 = vmatpush.bf16.msrb.mxu3 %v2938_v39  ;;  %1080 = vmatpush.bf16.msrb.mxu2 %v2850_v55  ;;  %v2961_v55 = vld [vmem:[#allocation5 + $0xe8] sm:$0xf] }
  0x94   :  { %1056 = vmatpush.bf16.msrb.mxu0 %v2706_v62  ;;  %v2922_v62 = vor.u32 %v3707_v59, %v2919_v60  ;;  %v3730_v60 = vld [vmem:[#allocation5 + $0x468] sm:$0xf0] }
  0x95   :  { %1069 = vmatpush.bf16.msrb.mxu1 %v2770_v18  ;;  %v3701_v18 = vld [vmem:[#allocation7 + $0x324] sm:$0xf] }
  0x96   :  { %v2898_v22 = vor.u32 %v3701_v18, %v2895_v20 }
  0x97   :  { %1091 = vmatpush.bf16.msrb.mxu3 %v2930_v48  ;;  %1081 = vmatpush.bf16.msrb.mxu2 %v2842_v2  ;;  %v3720_v48 = vld [vmem:[#allocation5 + $0x198] sm:$0xf0]  ;;  %v3729_v2 = vld [vmem:[#allocation5 + $0x420] sm:$0xf0] }
  0x98   :  { %1057 = vmatpush.bf16.msrb.mxu0 %v2698_v11  ;;  %v2834_v11 = vor.u32 %v3685_v7, %v2831_v8  ;;  %v3716_v7 = vld [vmem:[#allocation5 + $0x78] sm:$0xf0]  ;;  %v3001_v8 = vld [vmem:[#allocation5 + $0x3b8] sm:$0xf] }
  0x99   :  { %1070 = vmatpush.bf16.msrb.mxu1 %v2762_v28 }
  0x9b   :  { %1092 = vmatpush.bf16.msrb.mxu3 %v2922_v62  ;;  %1082 = vmatpush.bf16.msrb.mxu2 %v2834_v11  ;;  %v2957_v62 = vld [vmem:[#allocation5 + $0xa0] sm:$0xf] }
  0x9f   :  { %1093 = vmatpush.bf16.msrb.mxu3 %v2914_v6  ;;  %1083 = vmatpush.bf16.msrb.mxu2 %v2826_v21  ;;  %v2953_v6 = vld [vmem:[#allocation5 + $0x58] sm:$0xf]  ;;  %v2993_v21 = vld [vmem:[#allocation5 + $0x328] sm:$0xf] }
  0xa0   :  { %v2954_v9 = vor.u32 %v3716_v7, %v2953_v6 }
  0xa3   :  { %1094 = vmatpush.bf16.msrb.mxu3 %v2906_v16  ;;  %v3727_v16 = vld [vmem:[#allocation5 + $0x390] sm:$0xf0] }
  0xa7   :  { %1095 = vmatpush.bf16.msrb.mxu3 %v2898_v22  ;;  %v3726_v22 = vld [vmem:[#allocation5 + $0x348] sm:$0xf0] }
  0xa8   :  { %v2994_v23 = vor.u32 %v3726_v22, %v2993_v21  ;;  %v3737_v22 = vld [vmem:[#allocation8 + $0x34] sm:$0xf] }
  0xab   :  { %1096 = vmatpush.bf16.msrb.mxu3 %v2890_v25  ;;  %v3725_v25 = vld [vmem:[#allocation5 + $0x300] sm:$0xf0] }
  0xb8   :  { %v505_v49 = vpop.f32.mrf.mxu0 }
  0xb9   :  { %v506_v38 = vadd.f32 %v505_v49, %v168_v31  ;;  %v518_v53 = vpop.f32.mrf.mxu1  ;;  %v171_v31 = vperm.slane %v4142_v19, 3  ;;  %v2973_v19 = vld [vmem:[#allocation5 + $0x1c0] sm:$0xf] }
  0xba   :  { %v2974_v46 = vor.u32 %v3721_v45, %v2973_v19  ;;  %v3743_v45 = vld [vmem:[#allocation8 + $0x64] sm:$0xf] }
  0xbb   :  { %v519_v42 = vadd.f32 %v518_v53, %v506_v38 }
  0xbd   :  { %v600_v47 = vmax.f32 %v519_v42, 0.0  ;;  %v2977_v42 = vld [vmem:[#allocation5 + $0x208] sm:$0xf] }
  0xbf   :  { %v668_v52 = vpack.c.bf16 %v600_v47, %v600_v47  ;;  %v2969_v47 = vld [vmem:[#allocation5 + $0x178] sm:$0xf] }
  0xc0   :  { %v531_v54 = vpop.f32.mrf.mxu2  ;;  %v507_v58 = vpop.f32.mrf.mxu0  ;;  %v2970_v51 = vor.u32 %v3720_v48, %v2969_v47 }
  0xc1   :  { %v532_v56 = vadd.f32 %v531_v54, %v169_v44  ;;  %v544_v57 = vpop.f32.mrf.mxu3  ;;  %1006 = vmatmul.bf16.vlgmr.msra.gmra.mxu0 %v668_v52  ;;  %v520_v61 = vpop.f32.mrf.mxu1  ;;  %v2978_v44 = vor.u32 %v3722_v43, %v2977_v42  ;;  %v3071_v42 = vld [vmem:[#allocation8 + $0x78] sm:$0xf0]  ;;  %v3061_v43 = vld [vmem:[#allocation8 + $0x60] sm:$0xf] }
  0xc3   :  { %v545_v63 = vadd.f32 %v544_v57, %v532_v56  ;;  %1238 = vmatpush.bf16.msra.mxu0 %v2978_v44  ;;  %v3718_v56 = vld [vmem:[#allocation5 + $0x108] sm:$0xf0]  ;;  %v3009_v57 = vld [vmem:[#allocation5 + $0x448] sm:$0xf] }
  0xc4   :  { %v2962_v59 = vor.u32 %v3718_v56, %v2961_v55  ;;  %v3010_v61 = vor.u32 %v3730_v60, %v3009_v57  ;;  %v3744_v44 = vld [vmem:[#allocation8 + $0x64] sm:$0xf0]  ;;  %v3055_v55 = vld [vmem:[#allocation8 + $0x58] sm:$0xf0] }
  0xc5   :  { %v601_v3 = vmax.f32 %v545_v63, 0.0  ;;  %v3717_v63 = vld [vmem:[#allocation5 + $0xc0] sm:$0xf0]  ;;  %v3062_v47 = vor.u32 %v3744_v44, %v3061_v43  ;;  %v3317_v43 = vld [vmem:[#allocation5 + $0x44c] sm:$0xf] }
  0xc6   :  { %v2958_v1 = vor.u32 %v3717_v63, %v2957_v62 }
  0xc7   :  { %v669_v10 = vpack.c.bf16 %v601_v3, %v601_v3  ;;  %1239 = vmatpush.bf16.msra.mxu0 %v2974_v46  ;;  %v3006_v3 = vor.u32 %v3729_v2, %v3005_v0  ;;  %v3063_v46 = vld [vmem:[#allocation8 + $0x68] sm:$0xf0] }
  0xc8   :  { %v533_v15 = vpop.f32.mrf.mxu2  ;;  %v3066_v48 = vor.u32 %v3743_v45, %v3063_v46  ;;  %v3775_v45 = vld [vmem:[#allocation5 + $0x210] sm:$0xf]  ;;  %v3191_v46 = vld [vmem:[#allocation5 + $0x230] sm:$0xf0] }
  0xc9   :  { %1019 = vmatmul.bf16.vlgmr.msra.gmra.mxu1 %v669_v10  ;;  %v546_v17 = vpop.f32.mrf.mxu3  ;;  %v2950_v15 = vor.u32 %v3715_v13, %v2949_v12  ;;  %v3045_v12 = vld [vmem:[#allocation8 + $0x40] sm:$0xf]  ;;  %v3740_v13 = vld [vmem:[#allocation8 + $0x44] sm:$0xf0] }
  0xca   :  { %1251 = vmatpush.bf16.msra.mxu1 %v3010_v61  ;;  %v2998_v17 = vor.u32 %v3727_v16, %v2997_v14  ;;  %v3739_v14 = vld [vmem:[#allocation8 + $0x44] sm:$0xf]  ;;  %v3047_v16 = vld [vmem:[#allocation8 + $0x48] sm:$0xf0] }
  0xcb   :  { %1240 = vmatpush.bf16.msra.mxu0 %v2970_v51  ;;  %v3742_v51 = vld [vmem:[#allocation8 + $0x54] sm:$0xf0]  ;;  %v3050_v21 = vor.u32 %v3739_v14, %v3047_v16  ;;  %v3141_v14 = vld [vmem:[#allocation5 + $0x134] sm:$0xf] }
  0xcc   :  { %v3269_v16 = vld [vmem:[#allocation5 + $0x374] sm:$0xf] }
  0xce   :  { %1252 = vmatpush.bf16.msra.mxu1 %v3006_v3 }
  0xd1   :  { %1058 = vmatmul.bf16.vlgmr.msrb.gmra.mxu0 %v668_v52  ;;  %v3719_v52 = vld [vmem:[#allocation5 + $0x150] sm:$0xf0] }
  0xd2   :  { %v2966_v54 = vor.u32 %v3719_v52, %v2965_v50  ;;  %v3053_v50 = vld [vmem:[#allocation8 + $0x50] sm:$0xf] }
  0xd3   :  { %v3054_v57 = vor.u32 %v3742_v51, %v3053_v50  ;;  %v3807_v50 = vld [vmem:[#allocation5 + $0x450] sm:$0xf]  ;;  %v3319_v51 = vld [vmem:[#allocation5 + $0x470] sm:$0xf0] }
  0xd4   :  { %1241 = vmatpush.bf16.msra.mxu0 %v2966_v54  ;;  %v3741_v54 = vld [vmem:[#allocation8 + $0x54] sm:$0xf] }
  0xd8   :  { %v557_v27 = vpop.f32.mrf.mxu0  ;;  %1242 = vmatpush.bf16.msra.mxu0 %v2962_v59  ;;  %v3058_v59 = vor.u32 %v3741_v54, %v3055_v55  ;;  %v3322_v54 = vor.u32 %v3807_v50, %v3319_v51  ;;  %v3773_v55 = vld [vmem:[#allocation5 + $0x1e4] sm:$0xf0]  ;;  %v3093_v51 = vld [vmem:[#allocation5 + $0x5c] sm:$0xf] }
  0xd9   :  { %v558_v28 = vadd.f32 %v557_v27, %v170_v26  ;;  %v570_v29 = vpop.f32.mrf.mxu1  ;;  %1071 = vmatmul.bf16.vlgmr.msrb.gmra.mxu1 %v669_v10  ;;  %v3728_v10 = vld [vmem:[#allocation5 + $0x3d8] sm:$0xf0]  ;;  %v2990_v26 = vor.u32 %v3725_v25, %v2989_v24  ;;  %v3029_v25 = vld [vmem:[#allocation8 + $0x20] sm:$0xf] }
  0xda   :  { %v3002_v11 = vor.u32 %v3728_v10, %v3001_v8 }
  0xdb   :  { %v571_v30 = vadd.f32 %v570_v29, %v558_v28  ;;  %v2985_v29 = vld [vmem:[#allocation5 + $0x298] sm:$0xf] }
  0xdc   :  { %1243 = vmatpush.bf16.msra.mxu0 %v2958_v1  ;;  %1253 = vmatpush.bf16.msra.mxu1 %v3002_v11 }
  0xdd   :  { %v602_v32 = vmax.f32 %v571_v30, 0.0  ;;  %v3724_v30 = vld [vmem:[#allocation5 + $0x2b8] sm:$0xf0] }
  0xdf   :  { %v670_v33 = vpack.c.bf16 %v602_v32, %v602_v32  ;;  %v672_v32 = vld [vmem:[#allocation10 + $0x4] sm:$0x3] }
  0xe0   :  { %v583_v34 = vpop.f32.mrf.mxu2  ;;  %v559_v36 = vpop.f32.mrf.mxu0  ;;  %1244 = vmatpush.bf16.msra.mxu0 %v2954_v9  ;;  %1254 = vmatpush.bf16.msra.mxu1 %v2998_v17  ;;  %v675_v0 = vperm.slane %v672_v32, 1  ;;  %v3037_v17 = vld [vmem:[#allocation8 + $0x30] sm:$0xf] }
  0xe1   :  { %v584_v35 = vadd.f32 %v583_v34, %v171_v31  ;;  %v596_v49 = vpop.f32.mrf.mxu3  ;;  %v572_v37 = vpop.f32.mrf.mxu1  ;;  %1032 = vmatmul.bf16.vlgmr.msra.gmra.mxu2 %v670_v33  ;;  %v2986_v31 = vor.u32 %v3724_v30, %v2985_v29  ;;  %v3723_v34 = vld [vmem:[#allocation5 + $0x270] sm:$0xf0]  ;;  %v3031_v29 = vld [vmem:[#allocation8 + $0x28] sm:$0xf0]  ;;  %v3021_v30 = vld [vmem:[#allocation8 + $0x10] sm:$0xf] }
  0xe2   :  { %v3069_v37 = vld [vmem:[#allocation8 + $0x70] sm:$0xf] }
  0xe3   :  { %v597_v38 = vadd.f32 %v596_v49, %v584_v35  ;;  %v674_v49 = vperm.slane %v672_v32, 0 }
  0xe4   :  { %1245 = vmatpush.bf16.msra.mxu0 %v2950_v15  ;;  %1255 = vmatpush.bf16.msra.mxu1 %v2994_v23  ;;  %v3046_v15 = vor.u32 %v3740_v13, %v3045_v12  ;;  %v3039_v23 = vld [vmem:[#allocation8 + $0x38] sm:$0xf0] }
  0xe5   :  { %v603_v53 = vmax.f32 %v597_v38, 0.0  ;;  %v3746_v38 = vld [vmem:[#allocation8 + $0x74] sm:$0xf0]  ;;  %v3042_v24 = vor.u32 %v3737_v22, %v3039_v23  ;;  %v3143_v22 = vld [vmem:[#allocation5 + $0x158] sm:$0xf0] }
  0xe6   :  { %v3795_v23 = vld [vmem:[#allocation5 + $0x378] sm:$0xf] }
  0xe7   :  { %v671_v39 = vpack.c.bf16 %v603_v53, %v603_v53  ;;  %v3745_v53 = vld [vmem:[#allocation8 + $0x74] sm:$0xf] }
  0xe8   :  { %v585_v40 = vpop.f32.mrf.mxu2  ;;  %1256 = vmatpush.bf16.msra.mxu1 %v2990_v26  ;;  %v3074_v19 = vor.u32 %v3745_v53, %v3071_v42  ;;  %v3736_v26 = vld [vmem:[#allocation8 + $0x24] sm:$0xf0]  ;;  %v3777_v42 = vld [vmem:[#allocation5 + $0x22c] sm:$0xf0] }
  0xe9   :  { %v598_v41 = vpop.f32.mrf.mxu3  ;;  %1045 = vmatmul.bf16.vlgmr.msra.gmra.mxu3 %v671_v39 }
  0xea   :  { %v3070_v41 = vor.u32 %v3746_v38, %v3069_v37  ;;  %1381 = vmatpush.bf16.msra.mxu3 %v3074_v19  ;;  %v3732_v37 = vld [vmem:[#allocation8 + $0x4] sm:$0xf0]  ;;  %v3731_v38 = vld [vmem:[#allocation8 + $0x4] sm:$0xf]  ;;  %v3809_v19 = vld [vmem:[#allocation5 + $0x46c] sm:$0xf0] }
  0xec   :  { %1257 = vmatpush.bf16.msra.mxu1 %v2986_v31  ;;  %1368 = vmatpush.bf16.msra.mxu2 %v3070_v41  ;;  %v3734_v31 = vld [vmem:[#allocation8 + $0x14] sm:$0xf0]  ;;  %v3189_v41 = vld [vmem:[#allocation5 + $0x20c] sm:$0xf] }
  0xed   :  { %v3190_v44 = vor.u32 %v3777_v42, %v3189_v41  ;;  %v3789_v42 = vld [vmem:[#allocation5 + $0x304] sm:$0xf0] }
  0xee   :  { %1382 = vmatpush.bf16.msra.mxu3 %v3066_v48  ;;  %v3194_v48 = vor.u32 %v3775_v45, %v3191_v46  ;;  %v3239_v45 = vld [vmem:[#allocation5 + $0x308] sm:$0xf0]  ;;  %v3888_v46 = vld [vmem:[#allocation10 + $0x6] ss:$0 sm:$0xff] }
  0xef   :  { %1792 = vmatpush.bf16.msrb.mxu0 %v3190_v44  ;;  %v3111_v44 = vld [vmem:[#allocation5 + $0xc8] sm:$0xf0] }
  0xf0   :  { %1369 = vmatpush.bf16.msra.mxu2 %v3062_v47  ;;  %v3318_v47 = vor.u32 %v3809_v19, %v3317_v43  ;;  %v3755_v43 = vld [vmem:[#allocation5 + $0xa8] sm:$0xf] }
  0xf1   :  { %1084 = vmatmul.bf16.vlgmr.msrb.gmra.mxu2 %v670_v33  ;;  %v2981_v33 = vld [vmem:[#allocation5 + $0x250] sm:$0xf]  ;;  %v3787_v19 = vld [vmem:[#allocation5 + $0x2e8] sm:$0xf]  ;;  %v3114_v50 = vor.u32 %v3755_v43, %v3111_v44  ;;  %v3293_v43 = vld [vmem:[#allocation5 + $0x3c4] sm:$0xf] }
  0xf2   :  { %v2982_v35 = vor.u32 %v3723_v34, %v2981_v33  ;;  %1383 = vmatpush.bf16.msra.mxu3 %v3058_v59  ;;  %v3733_v33 = vld [vmem:[#allocation8 + $0x14] sm:$0xf]  ;;  %v3023_v34 = vld [vmem:[#allocation8 + $0x18] sm:$0xf0] }
  0xf4   :  { %1258 = vmatpush.bf16.msra.mxu1 %v2982_v35  ;;  %1370 = vmatpush.bf16.msra.mxu2 %v3054_v57  ;;  %v3022_v35 = vor.u32 %v3734_v31, %v3021_v30  ;;  %v3805_v57 = vld [vmem:[#allocation5 + $0x424] sm:$0xf0]  ;;  %v3793_v31 = vld [vmem:[#allocation5 + $0x34c] sm:$0xf0] }
  0xf6   :  { %1384 = vmatpush.bf16.msra.mxu3 %v3050_v21  ;;  %v3763_v21 = vld [vmem:[#allocation5 + $0x138] sm:$0xf] }
  0xf8   :  { %1371 = vmatpush.bf16.msra.mxu2 %v3046_v15  ;;  %1805 = vmatpush.bf16.msrb.mxu1 %v3318_v47  ;;  %v3765_v15 = vld [vmem:[#allocation5 + $0x154] sm:$0xf0] }
  0xf9   :  { %1097 = vmatmul.bf16.vlgmr.msrb.gmra.mxu3 %v671_v39 }
  0xfa   :  { %1385 = vmatpush.bf16.msra.mxu3 %v3042_v24  ;;  %v3142_v24 = vor.u32 %v3765_v15, %v3141_v14  ;;  %v3325_v14 = vld [vmem:[#allocation5 + $0x454] sm:$0xf]  ;;  %v3810_v15 = vld [vmem:[#allocation5 + $0x474] sm:$0xf0] }
 0x13e   :  { %v1007_v58 = vpop.f32.mrf.mxu0 }
 0x13f   :  { %v1008_v39 = vadd.f32 %v1007_v58, %v674_v49  ;;  %v3026_v49 = vor.u32 %v3733_v33, %v3023_v34  ;;  %v3127_v33 = vld [vmem:[#allocation5 + $0x110] sm:$0xf0]  ;;  %v3791_v34 = vld [vmem:[#allocation5 + $0x330] sm:$0xf] }
 0x146   :  { %v1020_v4 = vpop.f32.mrf.mxu1  ;;  %v1009_v5 = vpop.f32.mrf.mxu0 }
 0x147   :  { %v1021_v52 = vadd.f32 %v1020_v4, %v1008_v39  ;;  %v3015_v39 = vld [vmem:[#allocation8 + $0x8] sm:$0xf0] }
 0x14e   :  { %v1022_v18 = vpop.f32.mrf.mxu1  ;;  %v1059_v20 = vpop.f32.mrf.mxu0 }
 0x14f   :  { %v1060_v3 = vadd.f32 %v1059_v20, %v675_v0  ;;  %v3738_v18 = vld [vmem:[#allocation8 + $0x34] sm:$0xf0]  ;;  %v3303_v0 = vld [vmem:[#allocation5 + $0x428] sm:$0xf0] }
 0x150   :  { %v3038_v20 = vor.u32 %v3738_v18, %v3037_v17  ;;  %v3797_v18 = vld [vmem:[#allocation5 + $0x394] sm:$0xf0] }
 0x152   :  { %1372 = vmatpush.bf16.msra.mxu2 %v3038_v20  ;;  %v3271_v20 = vld [vmem:[#allocation5 + $0x398] sm:$0xf0] }
 0x153   :  { %v3274_v30 = vor.u32 %v3795_v23, %v3271_v20  ;;  %v3808_v20 = vld [vmem:[#allocation5 + $0x458] sm:$0xf] }
 0x156   :  { %v1072_v27 = vpop.f32.mrf.mxu1  ;;  %v1061_v28 = vpop.f32.mrf.mxu0 }
 0x157   :  { %v1073_v4 = vadd.f32 %v1072_v27, %v1060_v3  ;;  %v3735_v27 = vld [vmem:[#allocation8 + $0x24] sm:$0xf]  ;;  %v3030_v28 = vor.u32 %v3736_v26, %v3029_v25  ;;  %v3270_v25 = vor.u32 %v3797_v18, %v3269_v16  ;;  %v3146_v26 = vor.u32 %v3763_v21, %v3143_v22  ;;  %v3776_v18 = vld [vmem:[#allocation5 + $0x218] sm:$0xf]  ;;  %v3199_v21 = vld [vmem:[#allocation5 + $0x238] sm:$0xf0] }
 0x158   :  { %v3034_v32 = vor.u32 %v3735_v27, %v3031_v29  ;;  %v3125_v27 = vld [vmem:[#allocation5 + $0xec] sm:$0xf] }
 0x159   :  { %1373 = vmatpush.bf16.msra.mxu2 %v3030_v28  ;;  %v3761_v28 = vld [vmem:[#allocation5 + $0x10c] sm:$0xf0]  ;;  %v3253_v29 = vld [vmem:[#allocation5 + $0x32c] sm:$0xf] }
 0x15a   :  { %1386 = vmatpush.bf16.msra.mxu3 %v3034_v32  ;;  %v3759_v32 = vld [vmem:[#allocation5 + $0xf0] sm:$0xf] }
 0x15d   :  { %1374 = vmatpush.bf16.msra.mxu2 %v3022_v35  ;;  %v3255_v35 = vld [vmem:[#allocation5 + $0x350] sm:$0xf0] }
 0x15e   :  { %v1074_v36 = vpop.f32.mrf.mxu1  ;;  %1387 = vmatpush.bf16.msra.mxu3 %v3026_v49  ;;  %v3126_v49 = vor.u32 %v3761_v28, %v3125_v27  ;;  %v3258_v41 = vor.u32 %v3791_v34, %v3255_v35  ;;  %v3181_v27 = vld [vmem:[#allocation5 + $0x1cc] sm:$0xf]  ;;  %v3772_v34 = vld [vmem:[#allocation5 + $0x1d0] sm:$0xf]  ;;  %v3183_v35 = vld [vmem:[#allocation5 + $0x1f0] sm:$0xf0] }
 0x15f   :  { %v3013_v36 = vld [vmem:[#allocation8] sm:$0xf] }
 0x160   :  { %v3014_v53 = vor.u32 %v3732_v37, %v3013_v36  ;;  %v3254_v37 = vor.u32 %v3793_v31, %v3253_v29  ;;  %v3202_v29 = vor.u32 %v3776_v18, %v3199_v21  ;;  %v3309_v31 = vld [vmem:[#allocation5 + $0x40c] sm:$0xf] }
 0x162   :  { %1375 = vmatpush.bf16.msra.mxu2 %v3014_v53  ;;  %v3109_v53 = vld [vmem:[#allocation5 + $0xa4] sm:$0xf] }
 0x164   :  { %v1033_v40 = vpop.f32.mrf.mxu2 }
 0x165   :  { %v1034_v56 = vadd.f32 %v1033_v40, %v1021_v52  ;;  %v3018_v40 = vor.u32 %v3731_v38, %v3015_v39  ;;  %v3173_v52 = vld [vmem:[#allocation5 + $0x1c4] sm:$0xf]  ;;  %v3130_v38 = vor.u32 %v3759_v32, %v3127_v33  ;;  %v3757_v39 = vld [vmem:[#allocation5 + $0xc4] sm:$0xf0]  ;;  %v3806_v32 = vld [vmem:[#allocation5 + $0x42c] sm:$0xf0] }
 0x166   :  { %1818 = vmatpush.bf16.msrb.mxu2 %v3194_v48  ;;  %v3110_v47 = vor.u32 %v3757_v39, %v3109_v53  ;;  %v3310_v53 = vor.u32 %v3806_v32, %v3309_v31  ;;  %v3186_v39 = vor.u32 %v3772_v34, %v3183_v35  ;;  %v3752_v31 = vld [vmem:[#allocation5 + $0x68] sm:$0xf]  ;;  %v3231_v35 = vld [vmem:[#allocation5 + $0x2c8] sm:$0xf0] }
 0x167   :  { %1388 = vmatpush.bf16.msra.mxu3 %v3018_v40  ;;  %v3237_v40 = vld [vmem:[#allocation5 + $0x2e4] sm:$0xf]  ;;  %v3784_v34 = vld [vmem:[#allocation5 + $0x2a8] sm:$0xf] }
 0x168   :  { %v3238_v48 = vor.u32 %v3789_v42, %v3237_v40  ;;  %v3770_v42 = vld [vmem:[#allocation5 + $0x1a4] sm:$0xf0] }
 0x16b   :  { %1831 = vmatpush.bf16.msrb.mxu3 %v3322_v54  ;;  %v3221_v54 = vld [vmem:[#allocation5 + $0x29c] sm:$0xf] }
 0x16c   :  { %v1046_v58 = vpop.f32.mrf.mxu3  ;;  %v1035_v61 = vpop.f32.mrf.mxu2 }
 0x16d   :  { %v1047_v60 = vadd.f32 %v1046_v58, %v1034_v56  ;;  %v3301_v56 = vld [vmem:[#allocation5 + $0x404] sm:$0xf]  ;;  %v3174_v58 = vor.u32 %v3773_v55, %v3173_v52  ;;  %v3175_v61 = vld [vmem:[#allocation5 + $0x1e8] sm:$0xf0]  ;;  %v3753_v52 = vld [vmem:[#allocation5 + $0x7c] sm:$0xf0]  ;;  %v3242_v55 = vor.u32 %v3787_v19, %v3239_v45 }
 0x16e   :  { %v3302_v59 = vor.u32 %v3805_v57, %v3301_v56  ;;  %v3785_v56 = vld [vmem:[#allocation5 + $0x2bc] sm:$0xf0]  ;;  %v3802_v19 = vld [vmem:[#allocation5 + $0x3e4] sm:$0xf0] }
 0x16f   :  { %v1102_v62 = vmax.f32 %v1047_v60, 0.0  ;;  %v3771_v60 = vld [vmem:[#allocation5 + $0x1c8] sm:$0xf]  ;;  %1793 = vmatpush.bf16.msrb.mxu0 %v3174_v58  ;;  %v3751_v57 = vld [vmem:[#allocation5 + $0x60] sm:$0xf] }
 0x170   :  { %1806 = vmatpush.bf16.msrb.mxu1 %v3302_v59  ;;  %v3095_v58 = vld [vmem:[#allocation5 + $0x80] sm:$0xf0]  ;;  %v3783_v59 = vld [vmem:[#allocation5 + $0x2a0] sm:$0xf]  ;;  %v3768_v45 = vld [vmem:[#allocation5 + $0x188] sm:$0xf] }
 0x171   :  { %v1136_v63 = vpack.c.bf16 %v1102_v62, %v1102_v62  ;;  %v3803_v62 = vld [vmem:[#allocation5 + $0x408] sm:$0xf] }
 0x172   :  { %v3306_v3 = vor.u32 %v3803_v62, %v3303_v0  ;;  %v3094_v62 = vor.u32 %v3753_v52, %v3093_v51  ;;  %v3749_v0 = vld [vmem:[#allocation5 + $0x34] sm:$0xf0]  ;;  %v3295_v51 = vld [vmem:[#allocation5 + $0x3e8] sm:$0xf0] }
 0x173   :  { %1246 = vmatmul.bf16.vlgmr.msra.gmra.mxu0 %v1136_v63  ;;  %v3178_v63 = vor.u32 %v3771_v60, %v3175_v61  ;;  %v3223_v60 = vld [vmem:[#allocation5 + $0x2c0] sm:$0xf0] }
 0x174   :  { %v1048_v1 = vpop.f32.mrf.mxu3  ;;  %v1085_v2 = vpop.f32.mrf.mxu2  ;;  %1832 = vmatpush.bf16.msrb.mxu3 %v3306_v3  ;;  %v3222_v3 = vor.u32 %v3785_v56, %v3221_v54  ;;  %v3149_v54 = vld [vmem:[#allocation5 + $0x13c] sm:$0xf] }
 0x175   :  { %v1086_v5 = vadd.f32 %v1085_v2, %v1073_v4  ;;  %v3157_v1 = vld [vmem:[#allocation5 + $0x17c] sm:$0xf]  ;;  %v3769_v2 = vld [vmem:[#allocation5 + $0x19c] sm:$0xf0]  ;;  %1819 = vmatpush.bf16.msrb.mxu2 %v3178_v63  ;;  %v3077_v63 = vld [vmem:[#allocation5 + $0x14] sm:$0xf] }
 0x176   :  { %v3285_v4 = vld [vmem:[#allocation5 + $0x3bc] sm:$0xf] }
 0x177   :  { %v3277_v56 = vld [vmem:[#allocation5 + $0x37c] sm:$0xf] }
 0x17c   :  { %v1098_v6 = vpop.f32.mrf.mxu3  ;;  %v1087_v8 = vpop.f32.mrf.mxu2 }
 0x17d   :  { %v1099_v7 = vadd.f32 %v1098_v6, %v1086_v5  ;;  %v3801_v5 = vld [vmem:[#allocation5 + $0x3dc] sm:$0xf0]  ;;  %v3159_v8 = vld [vmem:[#allocation5 + $0x1a0] sm:$0xf0] }
 0x17e   :  { %v3767_v6 = vld [vmem:[#allocation5 + $0x180] sm:$0xf]  ;;  %v3286_v12 = vor.u32 %v3801_v5, %v3285_v4  ;;  %v3098_v4 = vor.u32 %v3751_v57, %v3095_v58  ;;  %v3781_v5 = vld [vmem:[#allocation5 + $0x274] sm:$0xf0] }
 0x17f   :  { %v1103_v9 = vmax.f32 %v1099_v7, 0.0  ;;  %v3158_v7 = vor.u32 %v3769_v2, %v3157_v1  ;;  %v3162_v13 = vor.u32 %v3767_v6, %v3159_v8  ;;  %v3205_v1 = vld [vmem:[#allocation5 + $0x254] sm:$0xf]  ;;  %v3747_v6 = vld [vmem:[#allocation5 + $0x18] sm:$0xf] }
 0x180   :  { %1807 = vmatpush.bf16.msrb.mxu1 %v3286_v12  ;;  %v3197_v12 = vld [vmem:[#allocation5 + $0x214] sm:$0xf]  ;;  %v3206_v22 = vor.u32 %v3781_v5, %v3205_v1  ;;  %v3798_v58 = vld [vmem:[#allocation5 + $0x39c] sm:$0xf0] }
 0x181   :  { %v1137_v10 = vpack.c.bf16 %v1103_v9, %v1103_v9  ;;  %v3799_v9 = vld [vmem:[#allocation5 + $0x3c0] sm:$0xf]  ;;  %1794 = vmatpush.bf16.msrb.mxu0 %v3158_v7  ;;  %1820 = vmatpush.bf16.msrb.mxu2 %v3162_v13  ;;  %v3079_v7 = vld [vmem:[#allocation5 + $0x38] sm:$0xf0]  ;;  %v3226_v13 = vor.u32 %v3783_v59, %v3223_v60  ;;  %v3151_v60 = vld [vmem:[#allocation5 + $0x160] sm:$0xf0] }
 0x182   :  { %v3082_v23 = vor.u32 %v3747_v6, %v3079_v7  ;;  %v3764_v59 = vld [vmem:[#allocation5 + $0x140] sm:$0xf]  ;;  %v3794_v6 = vld [vmem:[#allocation5 + $0x354] sm:$0xf0] }
 0x183   :  { %1259 = vmatmul.bf16.vlgmr.msra.gmra.mxu1 %v1137_v10  ;;  %v3287_v10 = vld [vmem:[#allocation5 + $0x3e0] sm:$0xf0]  ;;  %v3760_v7 = vld [vmem:[#allocation5 + $0xf8] sm:$0xf] }
 0x184   :  { %v1100_v11 = vpop.f32.mrf.mxu3  ;;  %v3290_v17 = vor.u32 %v3799_v9, %v3287_v10  ;;  %1808 = vmatpush.bf16.msrb.mxu1 %v3270_v25  ;;  %v3779_v9 = vld [vmem:[#allocation5 + $0x258] sm:$0xf]  ;;  %v3207_v10 = vld [vmem:[#allocation5 + $0x278] sm:$0xf0] }
 0x185   :  { %1795 = vmatpush.bf16.msrb.mxu0 %v3142_v24  ;;  %1821 = vmatpush.bf16.msrb.mxu2 %v3146_v26  ;;  %v3327_v24 = vld [vmem:[#allocation5 + $0x478] sm:$0xf0]  ;;  %v3326_v26 = vor.u32 %v3810_v15, %v3325_v14  ;;  %v3210_v28 = vor.u32 %v3779_v9, %v3207_v10  ;;  %v3758_v15 = vld [vmem:[#allocation5 + $0xcc] sm:$0xf0] }
 0x186   :  { %1833 = vmatpush.bf16.msrb.mxu3 %v3290_v17  ;;  %v3078_v17 = vor.u32 %v3749_v0, %v3077_v63  ;;  %v3330_v33 = vor.u32 %v3808_v20, %v3327_v24  ;;  %v3796_v63 = vld [vmem:[#allocation5 + $0x380] sm:$0xf]  ;;  %v3279_v0 = vld [vmem:[#allocation5 + $0x3a0] sm:$0xf0]  ;;  %v3788_v20 = vld [vmem:[#allocation5 + $0x2f0] sm:$0xf] }
 0x187   :  { %v3282_v1 = vor.u32 %v3796_v63, %v3279_v0 }
 0x188   :  { %1809 = vmatpush.bf16.msrb.mxu1 %v3254_v37  ;;  %v3311_v37 = vld [vmem:[#allocation5 + $0x430] sm:$0xf0] }
 0x189   :  { %1796 = vmatpush.bf16.msrb.mxu0 %v3126_v49  ;;  %1822 = vmatpush.bf16.msrb.mxu2 %v3130_v38 }
 0x18a   :  { %1834 = vmatpush.bf16.msrb.mxu3 %v3274_v30  ;;  %v3774_v30 = vld [vmem:[#allocation5 + $0x1ec] sm:$0xf0] }
 0x18b   :  { %v3182_v38 = vor.u32 %v3774_v30, %v3181_v27  ;;  %v3754_v27 = vld [vmem:[#allocation5 + $0x84] sm:$0xf0] }
 0x18c   :  { %1810 = vmatpush.bf16.msrb.mxu1 %v3238_v48  ;;  %v3786_v30 = vld [vmem:[#allocation5 + $0x2c4] sm:$0xf0] }
 0x18d   :  { %1797 = vmatpush.bf16.msrb.mxu0 %v3110_v47  ;;  %1823 = vmatpush.bf16.msrb.mxu2 %v3114_v50  ;;  %v3294_v47 = vor.u32 %v3802_v19, %v3293_v43  ;;  %v3800_v50 = vld [vmem:[#allocation5 + $0x3c8] sm:$0xf]  ;;  %v3780_v43 = vld [vmem:[#allocation5 + $0x260] sm:$0xf] }
 0x18e   :  { %1835 = vmatpush.bf16.msrb.mxu3 %v3258_v41  ;;  %v3165_v41 = vld [vmem:[#allocation5 + $0x184] sm:$0xf]  ;;  %v3298_v52 = vor.u32 %v3800_v50, %v3295_v51 }
 0x18f   :  { %v3166_v44 = vor.u32 %v3770_v42, %v3165_v41  ;;  %v3748_v41 = vld [vmem:[#allocation5 + $0x20] sm:$0xf]  ;;  %v3087_v42 = vld [vmem:[#allocation5 + $0x40] sm:$0xf0] }
 0x190   :  { %1811 = vmatpush.bf16.msrb.mxu1 %v3222_v3  ;;  %v3762_v3 = vld [vmem:[#allocation5 + $0x114] sm:$0xf0] }
 0x191   :  { %1798 = vmatpush.bf16.msrb.mxu0 %v3094_v62  ;;  %1824 = vmatpush.bf16.msrb.mxu2 %v3098_v4  ;;  %v3154_v62 = vor.u32 %v3764_v59, %v3151_v60  ;;  %v3261_v4 = vld [vmem:[#allocation5 + $0x334] sm:$0xf]  ;;  %v3453_v59 = vld [vmem:[#allocation7 + $0x1e8] sm:$0xf]  ;;  %v3842_v60 = vld [vmem:[#allocation7 + $0x1f4] sm:$0xf0] }
 0x192   :  { %1836 = vmatpush.bf16.msrb.mxu3 %v3242_v55  ;;  %v3766_v55 = vld [vmem:[#allocation5 + $0x15c] sm:$0xf0]  ;;  %v3262_v9 = vor.u32 %v3794_v6, %v3261_v4  ;;  %v3381_v6 = vld [vmem:[#allocation7 + $0xc8] sm:$0xf] }
 0x193   :  { %v3150_v57 = vor.u32 %v3766_v55, %v3149_v54 }
 0x194   :  { %1812 = vmatpush.bf16.msrb.mxu1 %v3206_v22  ;;  %v3756_v22 = vld [vmem:[#allocation5 + $0xb0] sm:$0xf] }
 0x195   :  { %1799 = vmatpush.bf16.msrb.mxu0 %v3078_v17  ;;  %1825 = vmatpush.bf16.msrb.mxu2 %v3082_v23  ;;  %v3790_v17 = vld [vmem:[#allocation5 + $0x30c] sm:$0xf0]  ;;  %v3119_v23 = vld [vmem:[#allocation5 + $0xd0] sm:$0xf0] }
 0x196   :  { %1837 = vmatpush.bf16.msrb.mxu3 %v3226_v13  ;;  %v3263_v13 = vld [vmem:[#allocation5 + $0x358] sm:$0xf0]  ;;  %v3122_v24 = vor.u32 %v3756_v22, %v3119_v23  ;;  %v3373_v22 = vld [vmem:[#allocation7 + $0xa8] sm:$0xf]  ;;  %v3822_v23 = vld [vmem:[#allocation7 + $0xb4] sm:$0xf0] }
 0x198   :  { %1857 = vmatpush.bf16.msra.mxu1 %v3326_v26  ;;  %v3101_v26 = vld [vmem:[#allocation5 + $0x64] sm:$0xf] }
 0x199   :  { %v3102_v32 = vor.u32 %v3754_v27, %v3101_v26  ;;  %v3501_v27 = vld [vmem:[#allocation7 + $0x2a8] sm:$0xf] }
 0x19a   :  { %1838 = vmatpush.bf16.msrb.mxu3 %v3210_v28 }
 0x19c   :  { %1858 = vmatpush.bf16.msra.mxu1 %v3310_v53  ;;  %v3213_v53 = vld [vmem:[#allocation5 + $0x25c] sm:$0xf] }
 0x1a0   :  { %1859 = vmatpush.bf16.msra.mxu1 %v3294_v47 }
 0x1f0   :  { %v4148_v11 = vpop.f32.mrf.mxu0 }
 0x1f1   :  { %v1248_v61 = vadd.f32 %v3888_v46, %v4148_v11  ;;  %v3778_v11 = vld [vmem:[#allocation5 + $0x234] sm:$0xf0]  ;;  %v3167_v46 = vld [vmem:[#allocation5 + $0x1a8] sm:$0xf0] }
 0x1f2   :  { %v3198_v25 = vor.u32 %v3778_v11, %v3197_v12  ;;  %v3170_v48 = vor.u32 %v3768_v45, %v3167_v46  ;;  %v3792_v12 = vld [vmem:[#allocation5 + $0x338] sm:$0xf]  ;;  %v3117_v11 = vld [vmem:[#allocation5 + $0xac] sm:$0xf]  ;;  %v3090_v46 = vor.u32 %v3748_v41, %v3087_v42 }
 0x1f3   :  { %v3266_v14 = vor.u32 %v3792_v12, %v3263_v13  ;;  %v3118_v18 = vor.u32 %v3758_v15, %v3117_v11  ;;  %v3509_v13 = vld [vmem:[#allocation7 + $0x2c8] sm:$0xf]  ;;  %v3868_v41 = vld [vmem:[#allocation7 + $0x394] sm:$0xf0] }
 0x1f4   :  { %1844 = vmatpush.bf16.msra.mxu0 %v3198_v25  ;;  %v3247_v25 = vld [vmem:[#allocation5 + $0x310] sm:$0xf0]  ;;  %v3573_v15 = vld [vmem:[#allocation7 + $0x3c8] sm:$0xf] }
 0x1f5   :  { %v3250_v28 = vor.u32 %v3788_v20, %v3247_v25  ;;  %v3838_v25 = vld [vmem:[#allocation7 + $0x1b4] sm:$0xf0] }
 0x1f8   :  { %v1249_v36 = vpop.f32.mrf.mxu0  ;;  %1845 = vmatpush.bf16.msra.mxu0 %v3182_v38  ;;  %v3750_v38 = vld [vmem:[#allocation5 + $0x3c] sm:$0xf0] }
 0x1f9   :  { %v3804_v36 = vld [vmem:[#allocation5 + $0x410] sm:$0xf] }
 0x1fa   :  { %v3314_v40 = vor.u32 %v3804_v36, %v3311_v37  ;;  %v3085_v37 = vld [vmem:[#allocation5 + $0x1c] sm:$0xf] }
 0x1fb   :  { %v3086_v19 = vor.u32 %v3750_v38, %v3085_v37  ;;  %v3493_v38 = vld [vmem:[#allocation7 + $0x288] sm:$0xf] }
 0x1fc   :  { %1846 = vmatpush.bf16.msra.mxu0 %v3166_v44  ;;  %v3215_v44 = vld [vmem:[#allocation5 + $0x280] sm:$0xf0] }
 0x1fd   :  { %v3218_v47 = vor.u32 %v3780_v43, %v3215_v44  ;;  %v3357_v43 = vld [vmem:[#allocation7 + $0x68] sm:$0xf] }
 0x200   :  { %v1260_v2 = vpop.f32.mrf.mxu1  ;;  %1847 = vmatpush.bf16.msra.mxu0 %v3150_v57  ;;  %v3389_v57 = vld [vmem:[#allocation7 + $0xe8] sm:$0xf] }
 0x201   :  { %v1261_v8 = vadd.f32 %v1260_v2, %v1248_v61  ;;  %v3278_v61 = vor.u32 %v3798_v58, %v3277_v56  ;;  %v3133_v2 = vld [vmem:[#allocation5 + $0xf4] sm:$0xf]  ;;  %v3826_v58 = vld [vmem:[#allocation7 + $0xf4] sm:$0xf0] }
 0x202   :  { %v3134_v5 = vor.u32 %v3762_v3, %v3133_v2  ;;  %v3874_v2 = vld [vmem:[#allocation7 + $0x3f4] sm:$0xf0] }
 0x203   :  { %1264 = vst [vmem:[#allocation12] sm:$0xff] %v1261_v8  ;;  %v1281_v16 = vpack.c.bf16 %v1261_v8, %v1261_v8  ;;  %1860 = vmatpush.bf16.msra.mxu1 %v3278_v61  ;;  %v3135_v8 = vld [vmem:[#allocation5 + $0x118] sm:$0xf0]  ;;  %v3517_v61 = vld [vmem:[#allocation7 + $0x2e8] sm:$0xf] }
 0x204   :  { %v3138_v10 = vor.u32 %v3760_v7, %v3135_v8  ;;  %1848 = vmatpush.bf16.msra.mxu0 %v3134_v5  ;;  %v3390_v5 = vor.u32 %v3826_v58, %v3389_v57  ;;  %v3824_v7 = vld [vmem:[#allocation7 + $0xd4] sm:$0xf0]  ;;  %v3454_v8 = vor.u32 %v3842_v60, %v3453_v59  ;;  %v3413_v57 = vld [vmem:[#allocation7 + $0x148] sm:$0xf]  ;;  %2421 = dma.vmem_to_hbm [thread:$0]  %s2417_s4, 128, %s2419_s27, [#allocation13]  }
 0x205   :  { %1376 = vmatmul.bf16.vlgmr.msra.gmra.mxu2 %v1281_v16  ;;  %1389 = vmatmul.bf16.vlgmr.msra.gmra.mxu3 %v1281_v16  ;;  %v3245_v16 = vld [vmem:[#allocation5 + $0x2ec] sm:$0xf]  ;;  %v3832_v58 = vld [vmem:[#allocation7 + $0x154] sm:$0xf0] }
 0x206   :  { %1870 = vmatpush.bf16.msra.mxu2 %v3202_v29  ;;  %1883 = vmatpush.bf16.msra.mxu3 %v3330_v33  ;;  %v3246_v21 = vor.u32 %v3790_v17, %v3245_v16  ;;  %v3229_v29 = vld [vmem:[#allocation5 + $0x2a4] sm:$0xf]  ;;  %v3103_v33 = vld [vmem:[#allocation5 + $0x88] sm:$0xf0]  ;;  %v3872_v16 = vld [vmem:[#allocation7 + $0x3d4] sm:$0xf0] }
 0x207   :  { %1861 = vmatpush.bf16.msra.mxu1 %v3262_v9  ;;  %v3106_v36 = vor.u32 %v3752_v31, %v3103_v33  ;;  %v3445_v9 = vld [vmem:[#allocation7 + $0x1c8] sm:$0xf]  ;;  %v3870_v31 = vld [vmem:[#allocation7 + $0x3b4] sm:$0xf0] }
 0x208   :  { %v1262_v49 = vpop.f32.mrf.mxu1  ;;  %1849 = vmatpush.bf16.msra.mxu0 %v3118_v18  ;;  %v3365_v33 = vld [vmem:[#allocation7 + $0x88] sm:$0xf] }
 0x209   :  { %v3230_v49 = vor.u32 %v3786_v30, %v3229_v29  ;;  %v3854_v29 = vld [vmem:[#allocation7 + $0x2b4] sm:$0xf0]  ;;  %v3565_v30 = vld [vmem:[#allocation7 + $0x3a8] sm:$0xf] }
 0x20a   :  { %1871 = vmatpush.bf16.msra.mxu2 %v3186_v39  ;;  %1884 = vmatpush.bf16.msra.mxu3 %v3314_v40  ;;  %v3234_v39 = vor.u32 %v3784_v34, %v3231_v35  ;;  %v3782_v40 = vld [vmem:[#allocation5 + $0x27c] sm:$0xf0]  ;;  %v3820_v34 = vld [vmem:[#allocation7 + $0x94] sm:$0xf0]  ;;  %v3502_v37 = vor.u32 %v3854_v29, %v3501_v27  ;;  %v3839_v29 = vld [vmem:[#allocation7 + $0x1cc] sm:$0xf] }
 0x20b   :  { %1862 = vmatpush.bf16.msra.mxu1 %v3246_v21  ;;  %v3214_v45 = vor.u32 %v3782_v40, %v3213_v53  ;;  %v3382_v21 = vor.u32 %v3824_v7, %v3381_v6  ;;  %v3566_v53 = vor.u32 %v3870_v31, %v3565_v30  ;;  %v3557_v40 = vld [vmem:[#allocation7 + $0x388] sm:$0xf]  ;;  %v3366_v42 = vor.u32 %v3820_v34, %v3365_v33  ;;  %v3812_v7 = vld [vmem:[#allocation7 + $0x14] sm:$0xf0]  ;;  %v3447_v30 = vld [vmem:[#allocation7 + $0x1d8] sm:$0xf0] }
 0x20c   :  { %1850 = vmatpush.bf16.msra.mxu0 %v3102_v32  ;;  %v3374_v32 = vor.u32 %v3822_v23, %v3373_v22  ;;  %v3848_v22 = vld [vmem:[#allocation7 + $0x254] sm:$0xf0]  ;;  %v3450_v31 = vor.u32 %v3839_v29, %v3447_v30  ;;  %v3407_v29 = vld [vmem:[#allocation7 + $0x138] sm:$0xf0] }
 0x20d   :  { %v3866_v27 = vld [vmem:[#allocation7 + $0x374] sm:$0xf0] }
 0x20e   :  { %1872 = vmatpush.bf16.msra.mxu2 %v3170_v48  ;;  %1885 = vmatpush.bf16.msra.mxu3 %v3298_v52  ;;  %v1282_v48 = vld [vmem:[#allocation10 + $0x7] sm:$0x3]  ;;  %v3846_v33 = vld [vmem:[#allocation7 + $0x234] sm:$0xf0] }
 0x20f   :  { %1863 = vmatpush.bf16.msra.mxu1 %v3230_v49  ;;  %v1284_v50 = vperm.slane %v1282_v48, 0  ;;  %v1285_v51 = vperm.slane %v1282_v48, 1  ;;  %v3429_v49 = vld [vmem:[#allocation7 + $0x188] sm:$0xf]  ;;  %v3558_v48 = vor.u32 %v3868_v41, %v3557_v40  ;;  %v3439_v40 = vld [vmem:[#allocation7 + $0x1b8] sm:$0xf0] }
 0x210   :  { %1851 = vmatpush.bf16.msra.mxu0 %v3086_v19  ;;  %v3818_v19 = vld [vmem:[#allocation7 + $0x74] sm:$0xf0] }
 0x212   :  { %1873 = vmatpush.bf16.msra.mxu2 %v3154_v62  ;;  %1886 = vmatpush.bf16.msra.mxu3 %v3282_v1  ;;  %v3858_v62 = vld [vmem:[#allocation7 + $0x2f4] sm:$0xf0]  ;;  %v3581_v1 = vld [vmem:[#allocation7 + $0x3e8] sm:$0xf] }
 0x213   :  { %1864 = vmatpush.bf16.msra.mxu1 %v3214_v45  ;;  %v3518_v12 = vor.u32 %v3858_v62, %v3517_v61  ;;  %v3582_v11 = vor.u32 %v3874_v2, %v3581_v1  ;;  %v3421_v45 = vld [vmem:[#allocation7 + $0x168] sm:$0xf]  ;;  %v3414_v62 = vor.u32 %v3832_v58, %v3413_v57  ;;  %v3830_v1 = vld [vmem:[#allocation7 + $0x134] sm:$0xf0]  ;;  %v3815_v58 = vld [vmem:[#allocation7 + $0x4c] sm:$0xf] }
 0x214   :  { %v3341_v61 = vld [vmem:[#allocation7 + $0x28] sm:$0xf] }
 0x216   :  { %1874 = vmatpush.bf16.msra.mxu2 %v3138_v10  ;;  %1887 = vmatpush.bf16.msra.mxu3 %v3266_v14  ;;  %v3840_v10 = vld [vmem:[#allocation7 + $0x1d4] sm:$0xf0] }
 0x217   :  { %v3856_v14 = vld [vmem:[#allocation7 + $0x2d4] sm:$0xf0]  ;;  %v3446_v20 = vor.u32 %v3840_v10, %v3445_v9  ;;  %v3391_v10 = vld [vmem:[#allocation7 + $0xf8] sm:$0xf0] }
 0x218   :  { %v3510_v26 = vor.u32 %v3856_v14, %v3509_v13  ;;  %v3828_v9 = vld [vmem:[#allocation7 + $0x114] sm:$0xf0]  ;;  %v3383_v14 = vld [vmem:[#allocation7 + $0xd8] sm:$0xf0] }
 0x21a   :  { %1875 = vmatpush.bf16.msra.mxu2 %v3122_v24  ;;  %1888 = vmatpush.bf16.msra.mxu3 %v3250_v28  ;;  %v3437_v24 = vld [vmem:[#allocation7 + $0x1a8] sm:$0xf]  ;;  %v3574_v28 = vor.u32 %v3872_v16, %v3573_v15  ;;  %v3841_v16 = vld [vmem:[#allocation7 + $0x1ec] sm:$0xf] }
 0x21b   :  { %v3438_v35 = vor.u32 %v3838_v25, %v3437_v24  ;;  %v3375_v24 = vld [vmem:[#allocation7 + $0xb8] sm:$0xf0] }
 0x21e   :  { %1876 = vmatpush.bf16.msra.mxu2 %v3106_v36  ;;  %1889 = vmatpush.bf16.msra.mxu3 %v3234_v39  ;;  %v3836_v36 = vld [vmem:[#allocation7 + $0x194] sm:$0xf0] }
 0x21f   :  { %v3852_v39 = vld [vmem:[#allocation7 + $0x294] sm:$0xf0]  ;;  %v3430_v44 = vor.u32 %v3836_v36, %v3429_v49  ;;  %v3367_v49 = vld [vmem:[#allocation7 + $0x98] sm:$0xf0] }
 0x222   :  { %1877 = vmatpush.bf16.msra.mxu2 %v3090_v46  ;;  %1890 = vmatpush.bf16.msra.mxu3 %v3218_v47  ;;  %v3834_v46 = vld [vmem:[#allocation7 + $0x174] sm:$0xf0]  ;;  %v3494_v47 = vor.u32 %v3852_v39, %v3493_v38  ;;  %v3837_v39 = vld [vmem:[#allocation7 + $0x1ac] sm:$0xf] }
 0x223   :  { %v3864_v38 = vld [vmem:[#allocation7 + $0x354] sm:$0xf0]  ;;  %v3442_v41 = vor.u32 %v3837_v39, %v3439_v40  ;;  %v3559_v40 = vld [vmem:[#allocation7 + $0x398] sm:$0xf0] }
 0x288   :  { %v1377_v52 = vpop.f32.mrf.mxu2  ;;  %v1390_v54 = vpop.f32.mrf.mxu3 }
 0x289   :  { %v1378_v55 = vadd.f32 %v1377_v52, %v1284_v50  ;;  %v1391_v56 = vadd.f32 %v1390_v54, %v1285_v51  ;;  %v3485_v50 = vld [vmem:[#allocation7 + $0x268] sm:$0xf]  ;;  %v3850_v51 = vld [vmem:[#allocation7 + $0x274] sm:$0xf0]  ;;  %v3358_v52 = vor.u32 %v3818_v19, %v3357_v43  ;;  %v3817_v19 = vld [vmem:[#allocation7 + $0x6c] sm:$0xf] }
 0x28a   :  { %v3349_v54 = vld [vmem:[#allocation7 + $0x48] sm:$0xf]  ;;  %v3486_v59 = vor.u32 %v3850_v51, %v3485_v50  ;;  %v3844_v43 = vld [vmem:[#allocation7 + $0x214] sm:$0xf0] }
 0x28b   :  { %v1394_v63 = vmax.f32 %v1378_v55, 0.0  ;;  %v1395_v0 = vmax.f32 %v1391_v56, 0.0  ;;  %v3422_v55 = vor.u32 %v3834_v46, %v3421_v45  ;;  %v3816_v56 = vld [vmem:[#allocation7 + $0x54] sm:$0xf0]  ;;  %v3359_v45 = vld [vmem:[#allocation7 + $0x78] sm:$0xf0] }
 0x28c   :  { %v3350_v60 = vor.u32 %v3816_v56, %v3349_v54  ;;  %v3857_v46 = vld [vmem:[#allocation7 + $0x2ec] sm:$0xf]  ;;  %v3533_v50 = vld [vmem:[#allocation7 + $0x328] sm:$0xf]  ;;  %v3862_v51 = vld [vmem:[#allocation7 + $0x334] sm:$0xf0] }
 0x28d   :  { %v4151_v3 = vpack.c.bf16 %v1394_v63, %v1394_v63  ;;  %v4153_v4 = vpack.c.bf16 %v1395_v0, %v1395_v0  ;;  %v3814_v63 = vld [vmem:[#allocation7 + $0x34] sm:$0xf0]  ;;  %v3405_v0 = vld [vmem:[#allocation7 + $0x128] sm:$0xf]  ;;  %v3534_v54 = vor.u32 %v3862_v51, %v3533_v50  ;;  %v3431_v56 = vld [vmem:[#allocation7 + $0x198] sm:$0xf0] }
 0x28e   :  { %v3342_v2 = vor.u32 %v3814_v63, %v3341_v61  ;;  %v3406_v6 = vor.u32 %v3830_v1, %v3405_v0  ;;  %v3525_v63 = vld [vmem:[#allocation7 + $0x308] sm:$0xf]  ;;  %v3860_v0 = vld [vmem:[#allocation7 + $0x314] sm:$0xf0]  ;;  %v3845_v51 = vld [vmem:[#allocation7 + $0x22c] sm:$0xf] }
 0x28f   :  { %1800 = vmatmul.bf16.vlgmr.msrb.gmra.mxu0 %v4151_v3  ;;  %1813 = vmatmul.bf16.vlgmr.msrb.gmra.mxu1 %v4153_v4 }
 0x290   :  { %1826 = vmatmul.bf16.vlgmr.msrb.gmra.mxu2 %v4151_v3  ;;  %1839 = vmatmul.bf16.vlgmr.msrb.gmra.mxu3 %v4153_v4  ;;  %v1379_v17 = vpop.f32.mrf.mxu2  ;;  %v1392_v18 = vpop.f32.mrf.mxu3 }
 0x291   :  { %2294 = vmatpush.bf16.msrb.mxu0 %v3390_v5  ;;  %2307 = vmatpush.bf16.msrb.mxu1 %v3454_v8  ;;  %v3333_v5 = vld [vmem:[#allocation7 + $0x8] sm:$0xf]  ;;  %v3455_v17 = vld [vmem:[#allocation7 + $0x1f8] sm:$0xf0] }
 0x292   :  { %2320 = vmatpush.bf16.msrb.mxu2 %v3518_v12  ;;  %2333 = vmatpush.bf16.msrb.mxu3 %v3582_v11  ;;  %v3397_v8 = vld [vmem:[#allocation7 + $0x108] sm:$0xf]  ;;  %v3823_v11 = vld [vmem:[#allocation7 + $0xcc] sm:$0xf]  ;;  %v3458_v18 = vor.u32 %v3841_v16, %v3455_v17  ;;  %v3415_v16 = vld [vmem:[#allocation7 + $0x158] sm:$0xf0] }
 0x293   :  { %v3398_v12 = vor.u32 %v3828_v9, %v3397_v8  ;;  %v3386_v15 = vor.u32 %v3823_v11, %v3383_v14  ;;  %v3583_v9 = vld [vmem:[#allocation7 + $0x3f8] sm:$0xf0]  ;;  %v3871_v17 = vld [vmem:[#allocation7 + $0x3cc] sm:$0xf] }
 0x294   :  { %v3503_v11 = vld [vmem:[#allocation7 + $0x2b8] sm:$0xf0] }
 0x295   :  { %2295 = vmatpush.bf16.msrb.mxu0 %v3382_v21  ;;  %2308 = vmatpush.bf16.msrb.mxu1 %v3446_v20  ;;  %v3477_v21 = vld [vmem:[#allocation7 + $0x248] sm:$0xf]  ;;  %v3821_v20 = vld [vmem:[#allocation7 + $0xac] sm:$0xf] }
 0x296   :  { %2321 = vmatpush.bf16.msrb.mxu2 %v3510_v26  ;;  %2334 = vmatpush.bf16.msrb.mxu3 %v3574_v28  ;;  %v3478_v23 = vor.u32 %v3848_v22, %v3477_v21  ;;  %v3378_v25 = vor.u32 %v3821_v20, %v3375_v24  ;;  %v3549_v26 = vld [vmem:[#allocation7 + $0x368] sm:$0xf]  ;;  %v3575_v21 = vld [vmem:[#allocation7 + $0x3d8] sm:$0xf0]  ;;  %v3851_v24 = vld [vmem:[#allocation7 + $0x28c] sm:$0xf] }
 0x297   :  { %v3550_v28 = vor.u32 %v3866_v27, %v3549_v26  ;;  %v3578_v22 = vor.u32 %v3871_v17, %v3575_v21  ;;  %v3335_v20 = vld [vmem:[#allocation7 + $0x18] sm:$0xf0] }
 0x298   :  { %v3495_v26 = vld [vmem:[#allocation7 + $0x298] sm:$0xf0] }
 0x299   :  { %2296 = vmatpush.bf16.msrb.mxu0 %v3374_v32  ;;  %2309 = vmatpush.bf16.msrb.mxu1 %v3438_v35  ;;  %v3469_v32 = vld [vmem:[#allocation7 + $0x228] sm:$0xf]  ;;  %v3819_v35 = vld [vmem:[#allocation7 + $0x8c] sm:$0xf]  ;;  %v3498_v27 = vor.u32 %v3851_v24, %v3495_v26 }
 0x29a   :  { %2322 = vmatpush.bf16.msrb.mxu2 %v3502_v37  ;;  %2335 = vmatpush.bf16.msrb.mxu3 %v3566_v53  ;;  %v3470_v34 = vor.u32 %v3846_v33, %v3469_v32  ;;  %v3370_v36 = vor.u32 %v3819_v35, %v3367_v49  ;;  %v3541_v37 = vld [vmem:[#allocation7 + $0x348] sm:$0xf]  ;;  %v3567_v32 = vld [vmem:[#allocation7 + $0x3b8] sm:$0xf0] }
 0x29b   :  { %v3542_v53 = vor.u32 %v3864_v38, %v3541_v37  ;;  %v3487_v35 = vld [vmem:[#allocation7 + $0x278] sm:$0xf0]  ;;  %v4163_v49 = vld [vmem:[#allocation10 + $0x9] sm:$0xf] }
 0x29c   :  { %v3827_v37 = vld [vmem:[#allocation7 + $0x10c] sm:$0xf]  ;;  %v3399_v38 = vld [vmem:[#allocation7 + $0x118] sm:$0xf0]  ;;  %v1467_v24 = vperm.slane %v4163_v49, 3 }
 0x29d   :  { %2297 = vmatpush.bf16.msrb.mxu0 %v3366_v42  ;;  %2310 = vmatpush.bf16.msrb.mxu1 %v3430_v44  ;;  %v3461_v42 = vld [vmem:[#allocation7 + $0x208] sm:$0xf]  ;;  %v3402_v39 = vor.u32 %v3827_v37, %v3399_v38 }
 0x29e   :  { %2323 = vmatpush.bf16.msrb.mxu2 %v3494_v47  ;;  %2336 = vmatpush.bf16.msrb.mxu3 %v3558_v48  ;;  %v3462_v44 = vor.u32 %v3844_v43, %v3461_v42  ;;  %v3362_v47 = vor.u32 %v3817_v19, %v3359_v45  ;;  %v3519_v48 = vld [vmem:[#allocation7 + $0x2f8] sm:$0xf0]  ;;  %v3847_v42 = vld [vmem:[#allocation7 + $0x24c] sm:$0xf] }
 0x29f   :  { %1852 = vmatmul.bf16.vlgmr.msra.gmra.mxu0 %v4151_v3  ;;  %1865 = vmatmul.bf16.vlgmr.msra.gmra.mxu1 %v4153_v4  ;;  %v3479_v43 = vld [vmem:[#allocation7 + $0x258] sm:$0xf0]  ;;  %v3865_v45 = vld [vmem:[#allocation7 + $0x36c] sm:$0xf] }
 0x2a0   :  { %1878 = vmatmul.bf16.vlgmr.msra.gmra.mxu2 %v4151_v3  ;;  %1891 = vmatmul.bf16.vlgmr.msra.gmra.mxu3 %v4153_v4  ;;  %v3825_v3 = vld [vmem:[#allocation7 + $0xec] sm:$0xf]  ;;  %v3334_v4 = vor.u32 %v3812_v7, %v3333_v5  ;;  %v3482_v19 = vor.u32 %v3847_v42, %v3479_v43 }
 0x2a1   :  { %2298 = vmatpush.bf16.msrb.mxu0 %v3358_v52  ;;  %2311 = vmatpush.bf16.msrb.mxu1 %v3422_v55  ;;  %v3394_v13 = vor.u32 %v3825_v3, %v3391_v10  ;;  %v3522_v52 = vor.u32 %v3857_v46, %v3519_v48  ;;  %v3835_v55 = vld [vmem:[#allocation7 + $0x18c] sm:$0xf]  ;;  %v3551_v46 = vld [vmem:[#allocation7 + $0x378] sm:$0xf0] }
 0x2a2   :  { %2324 = vmatpush.bf16.msrb.mxu2 %v3486_v59  ;;  %2337 = vmatpush.bf16.msrb.mxu3 %v3550_v28  ;;  %v3434_v57 = vor.u32 %v3835_v55, %v3431_v56  ;;  %v3351_v59 = vld [vmem:[#allocation7 + $0x58] sm:$0xf0]  ;;  %v3833_v5 = vld [vmem:[#allocation7 + $0x16c] sm:$0xf] }
 0x2a3   :  { %v3354_v61 = vor.u32 %v3815_v58, %v3351_v59  ;;  %v3873_v7 = vld [vmem:[#allocation7 + $0x3ec] sm:$0xf]  ;;  %v3463_v59 = vld [vmem:[#allocation7 + $0x218] sm:$0xf0] }
 0x2a4   :  { %v3586_v3 = vor.u32 %v3873_v7, %v3583_v9  ;;  %v3813_v10 = vld [vmem:[#allocation7 + $0x2c] sm:$0xf] }
 0x2a5   :  { %2299 = vmatpush.bf16.msrb.mxu0 %v3350_v60  ;;  %2312 = vmatpush.bf16.msrb.mxu1 %v3414_v62  ;;  %v3855_v60 = vld [vmem:[#allocation7 + $0x2cc] sm:$0xf]  ;;  %v3511_v62 = vld [vmem:[#allocation7 + $0x2d8] sm:$0xf0] }
 0x2a6   :  { %2325 = vmatpush.bf16.msrb.mxu2 %v3478_v23  ;;  %2338 = vmatpush.bf16.msrb.mxu3 %v3542_v53  ;;  %v3514_v1 = vor.u32 %v3855_v60, %v3511_v62  ;;  %v3811_v23 = vld [vmem:[#allocation7 + $0xc] sm:$0xf] }
 0x2a7   :  { %v3829_v28 = vld [vmem:[#allocation7 + $0x12c] sm:$0xf] }
 0x2a8   :  { %v3410_v30 = vor.u32 %v3829_v28, %v3407_v29  ;;  %v3867_v53 = vld [vmem:[#allocation7 + $0x38c] sm:$0xf] }
 0x2a9   :  { %2300 = vmatpush.bf16.msrb.mxu0 %v3342_v2  ;;  %2313 = vmatpush.bf16.msrb.mxu1 %v3406_v6  ;;  %v3526_v2 = vor.u32 %v3860_v0, %v3525_v63  ;;  %v3423_v6 = vld [vmem:[#allocation7 + $0x178] sm:$0xf0]  ;;  %v3843_v58 = vld [vmem:[#allocation7 + $0x20c] sm:$0xf]  ;;  %v1465_v0 = vperm.slane %v4163_v49, 1 }
 0x2aa   :  { %2326 = vmatpush.bf16.msrb.mxu2 %v3470_v34  ;;  %2339 = vmatpush.bf16.msrb.mxu3 %v3534_v54  ;;  %v3426_v8 = vor.u32 %v3833_v5, %v3423_v6  ;;  %v3849_v34 = vld [vmem:[#allocation7 + $0x26c] sm:$0xf]  ;;  %v3535_v63 = vld [vmem:[#allocation7 + $0x338] sm:$0xf0] }
 0x2ab   :  { %v3863_v54 = vld [vmem:[#allocation7 + $0x34c] sm:$0xf] }
 0x2ac   :  { %v3861_v62 = vld [vmem:[#allocation7 + $0x32c] sm:$0xf] }
 0x2ad   :  { %2301 = vmatpush.bf16.msrb.mxu0 %v3334_v4  ;;  %2314 = vmatpush.bf16.msrb.mxu1 %v3398_v12  ;;  %v3343_v4 = vld [vmem:[#allocation7 + $0x38] sm:$0xf0]  ;;  %v3538_v5 = vor.u32 %v3861_v62, %v3535_v63 }
 0x2ae   :  { %2327 = vmatpush.bf16.msrb.mxu2 %v3462_v44  ;;  %2340 = vmatpush.bf16.msrb.mxu3 %v3526_v2  ;;  %v3346_v12 = vor.u32 %v3813_v10, %v3343_v4  ;;  %v1464_v44 = vperm.slane %v4163_v49, 0  ;;  %v3859_v4 = vld [vmem:[#allocation7 + $0x30c] sm:$0xf] }
 0x2b1   :  { %2346 = vmatpush.bf16.msra.mxu0 %v3394_v13  ;;  %2359 = vmatpush.bf16.msra.mxu1 %v3458_v18  ;;  %v3853_v13 = vld [vmem:[#allocation7 + $0x2ac] sm:$0xf] }
 0x2b2   :  { %2372 = vmatpush.bf16.msra.mxu2 %v3522_v52  ;;  %2385 = vmatpush.bf16.msra.mxu3 %v3586_v3  ;;  %v3506_v14 = vor.u32 %v3853_v13, %v3503_v11  ;;  %v3471_v52 = vld [vmem:[#allocation7 + $0x238] sm:$0xf0] }
 0x2b3   :  { %v3474_v56 = vor.u32 %v3845_v51, %v3471_v52 }
 0x2b5   :  { %2347 = vmatpush.bf16.msra.mxu0 %v3386_v15  ;;  %2360 = vmatpush.bf16.msra.mxu1 %v3450_v31  ;;  %v3831_v15 = vld [vmem:[#allocation7 + $0x14c] sm:$0xf] }
 0x2b6   :  { %2373 = vmatpush.bf16.msra.mxu2 %v3514_v1  ;;  %v3418_v18 = vor.u32 %v3831_v15, %v3415_v16  ;;  %2386 = vmatpush.bf16.msra.mxu3 %v3578_v22  ;;  %v3869_v31 = vld [vmem:[#allocation7 + $0x3ac] sm:$0xf]  ;;  %v3466_v1 = vor.u32 %v3843_v58, %v3463_v59  ;;  %v1466_v15 = vperm.slane %v4163_v49, 2 }
 0x2b7   :  { %v3570_v33 = vor.u32 %v3869_v31, %v3567_v32 }
 0x2b9   :  { %2348 = vmatpush.bf16.msra.mxu0 %v3378_v25  ;;  %2361 = vmatpush.bf16.msra.mxu1 %v3442_v41  ;;  %v3338_v25 = vor.u32 %v3811_v23, %v3335_v20  ;;  %v3562_v41 = vor.u32 %v3867_v53, %v3559_v40  ;;  %v1968_v40 = vld [vmem:[#allocation10 + $0xd] sm:$0x3] }
 0x2ba   :  { %2374 = vmatpush.bf16.msra.mxu2 %v3506_v14  ;;  %2387 = vmatpush.bf16.msra.mxu3 %v3570_v33  ;;  %v1971_v52 = vperm.slane %v1968_v40, 1 }
 0x2bd   :  { %2349 = vmatpush.bf16.msra.mxu0 %v3370_v36  ;;  %2362 = vmatpush.bf16.msra.mxu1 %v3434_v57  ;;  %v3490_v36 = vor.u32 %v3849_v34, %v3487_v35  ;;  %v3543_v57 = vld [vmem:[#allocation7 + $0x358] sm:$0xf0] }
 0x2be   :  { %2375 = vmatpush.bf16.msra.mxu2 %v3498_v27  ;;  %2388 = vmatpush.bf16.msra.mxu3 %v3562_v41  ;;  %v3546_v60 = vor.u32 %v3863_v54, %v3543_v57  ;;  %v1970_v41 = vperm.slane %v1968_v40, 0 }
 0x2c1   :  { %2350 = vmatpush.bf16.msra.mxu0 %v3362_v47  ;;  %2363 = vmatpush.bf16.msra.mxu1 %v3426_v8  ;;  %v3554_v47 = vor.u32 %v3865_v45, %v3551_v46 }
 0x2c2   :  { %2376 = vmatpush.bf16.msra.mxu2 %v3490_v36 }
 0x2c3   :  { %2389 = vmatpush.bf16.msra.mxu3 %v3554_v47 }
 0x2c5   :  { %2351 = vmatpush.bf16.msra.mxu0 %v3354_v61  ;;  %2364 = vmatpush.bf16.msra.mxu1 %v3418_v18 }
 0x2c6   :  { %2377 = vmatpush.bf16.msra.mxu2 %v3482_v19 }
 0x2c7   :  { %2390 = vmatpush.bf16.msra.mxu3 %v3546_v60 }
 0x2c9   :  { %2352 = vmatpush.bf16.msra.mxu0 %v3346_v12  ;;  %2365 = vmatpush.bf16.msra.mxu1 %v3410_v30  ;;  %v3527_v12 = vld [vmem:[#allocation7 + $0x318] sm:$0xf0] }
 0x2ca   :  { %2378 = vmatpush.bf16.msra.mxu2 %v3474_v56  ;;  %v3530_v11 = vor.u32 %v3859_v4, %v3527_v12 }
 0x2cb   :  { %2391 = vmatpush.bf16.msra.mxu3 %v3538_v5 }
 0x2cd   :  { %2353 = vmatpush.bf16.msra.mxu0 %v3338_v25  ;;  %2366 = vmatpush.bf16.msra.mxu1 %v3402_v39 }
 0x2ce   :  { %2379 = vmatpush.bf16.msra.mxu2 %v3466_v1 }
 0x2cf   :  { %2392 = vmatpush.bf16.msra.mxu3 %v3530_v11 }
 0x30c   :  { %v1801_v48 = vpop.f32.mrf.mxu0  ;;  %v1814_v50 = vpop.f32.mrf.mxu1 }
 0x30d   :  { %v1802_v55 = vadd.f32 %v1801_v48, %v1464_v44 }
 0x30f   :  { %v1815_v61 = vadd.f32 %v1814_v50, %v1802_v55 }
 0x311   :  { %v1896_v2 = vmax.f32 %v1815_v61, 0.0 }
 0x313   :  { %v1964_v6 = vpack.c.bf16 %v1896_v2, %v1896_v2  ;;  %v1827_v7 = vpop.f32.mrf.mxu2  ;;  %v1840_v8 = vpop.f32.mrf.mxu3 }
 0x314   :  { %v1828_v9 = vadd.f32 %v1827_v7, %v1465_v0  ;;  %v1803_v3 = vpop.f32.mrf.mxu0  ;;  %v1816_v10 = vpop.f32.mrf.mxu1 }
 0x315   :  { %2302 = vmatmul.bf16.vlgmr.msrb.gmra.mxu0 %v1964_v6 }
 0x316   :  { %v1841_v13 = vadd.f32 %v1840_v8, %v1828_v9 }
 0x318   :  { %v1897_v14 = vmax.f32 %v1841_v13, 0.0 }
 0x31a   :  { %v1965_v16 = vpack.c.bf16 %v1897_v14, %v1897_v14 }
 0x31b   :  { %v1829_v17 = vpop.f32.mrf.mxu2  ;;  %v1842_v18 = vpop.f32.mrf.mxu3 }
 0x31c   :  { %2315 = vmatmul.bf16.vlgmr.msrb.gmra.mxu1 %v1965_v16  ;;  %v1853_v21 = vpop.f32.mrf.mxu0  ;;  %v1866_v22 = vpop.f32.mrf.mxu1 }
 0x31d   :  { %v1854_v23 = vadd.f32 %v1853_v21, %v1466_v15 }
 0x31f   :  { %v1867_v20 = vadd.f32 %v1866_v22, %v1854_v23 }
 0x321   :  { %v1898_v25 = vmax.f32 %v1867_v20, 0.0 }
 0x323   :  { %v1966_v26 = vpack.c.bf16 %v1898_v25, %v1898_v25  ;;  %v1879_v27 = vpop.f32.mrf.mxu2  ;;  %v1892_v28 = vpop.f32.mrf.mxu3 }
 0x324   :  { %v1880_v29 = vadd.f32 %v1879_v27, %v1467_v24  ;;  %v1855_v30 = vpop.f32.mrf.mxu0  ;;  %v1868_v31 = vpop.f32.mrf.mxu1 }
 0x325   :  { %2328 = vmatmul.bf16.vlgmr.msrb.gmra.mxu2 %v1966_v26  ;;  %2354 = vmatmul.bf16.vlgmr.msra.gmra.mxu0 %v1964_v6 }
 0x326   :  { %v1893_v32 = vadd.f32 %v1892_v28, %v1880_v29 }
 0x328   :  { %v1899_v33 = vmax.f32 %v1893_v32, 0.0 }
 0x32a   :  { %v1967_v34 = vpack.c.bf16 %v1899_v33, %v1899_v33 }
 0x32b   :  { %v1881_v35 = vpop.f32.mrf.mxu2  ;;  %v1894_v36 = vpop.f32.mrf.mxu3 }
 0x32c   :  { %2341 = vmatmul.bf16.vlgmr.msrb.gmra.mxu3 %v1967_v34  ;;  %2367 = vmatmul.bf16.vlgmr.msra.gmra.mxu1 %v1965_v16 }
 0x335   :  { %2380 = vmatmul.bf16.vlgmr.msra.gmra.mxu2 %v1966_v26 }
 0x33c   :  { %2393 = vmatmul.bf16.vlgmr.msra.gmra.mxu3 %v1967_v34 }
 0x392   :  { %v2303_v49 = vpop.f32.mrf.mxu0 }
 0x393   :  { %v2304_v44 = vadd.f32 %v2303_v49, %v1970_v41 }
 0x399   :  { %v2316_v37 = vpop.f32.mrf.mxu1 }
 0x39a   :  { %v2305_v38 = vpop.f32.mrf.mxu0  ;;  %v2317_v45 = vadd.f32 %v2316_v37, %v2304_v44 }
 0x3a1   :  { %v2318_v53 = vpop.f32.mrf.mxu1 }
 0x3a2   :  { %v2355_v39 = vpop.f32.mrf.mxu0 }
 0x3a3   :  { %v2356_v56 = vadd.f32 %v2355_v39, %v1971_v52 }
 0x3a8   :  { %v2329_v42 = vpop.f32.mrf.mxu2 }
 0x3a9   :  { %v2368_v43 = vpop.f32.mrf.mxu1  ;;  %v2330_v46 = vadd.f32 %v2329_v42, %v2317_v45 }
 0x3aa   :  { %v2357_v19 = vpop.f32.mrf.mxu0  ;;  %v2369_v57 = vadd.f32 %v2368_v43, %v2356_v56 }
 0x3af   :  { %v2342_v47 = vpop.f32.mrf.mxu3 }
 0x3b0   :  { %v2343_v48 = vadd.f32 %v2342_v47, %v2330_v46  ;;  %v2331_v50 = vpop.f32.mrf.mxu2 }
 0x3b1   :  { %v2370_v51 = vpop.f32.mrf.mxu1 }
 0x3b2   :  { %2398 = vst [vmem:[#allocation11] sm:$0xff] %v2343_v48 }
 0x3b7   :  { %v2344_v54 = vpop.f32.mrf.mxu3 }
 0x3b8   :  { %v2381_v55 = vpop.f32.mrf.mxu2 }
 0x3b9   :  { %v2382_v58 = vadd.f32 %v2381_v55, %v2369_v57 }
 0x3bf   :  { %v2394_v59 = vpop.f32.mrf.mxu3 }
 0x3c0   :  { %v2395_v60 = vadd.f32 %v2394_v59, %v2382_v58  ;;  %v2383_v61 = vpop.f32.mrf.mxu2 }
 0x3c2   :  { %2399 = vst [vmem:[#allocation11 + $0x8] sm:$0xff] %v2395_v60 }
 0x3c3   :  { %2410 = dma.vmem_to_hbm [thread:$0]  %s2406_s28, 256, %s2408_s7, [#allocation4]  }
 0x3c7   :  { %v2396_v62 = vpop.f32.mrf.mxu3 }
 0x3c8   :  { %4063 = dma.done.wait [#allocation4], 256  }
 0x3c9   :  { %4064 = vsyncadd [#allocation4], 4294967040 }
 0x3ca   :  { %4065 = dma.done.wait [#allocation13], 128  }
 0x3cb   :  { %4066 = vsyncadd [#allocation13], 4294967168 }
 0x3cc   :  { %2430 = vsyncpa [#allocation3], 1 }
 0x3cd   :  { %2431 = vsyncpa [#allocation6], 1 }
 0x3ce   :  { %2432 = vsyncpa [#allocation9], 1 }
 0x3cf   :  { %2433 = vsyncpa [#allocation4], 1 }
 0x3d0   :  { %2434 = vsyncpa [#allocation13], 1 }

</bundles_post_ra>
